<compile_context>
chip_gen: v5e
topology: v5e:2x2
jax: 0.10.0
libtpu: 0.0.40
codegen_flags: <defaults>
</compile_context>

<pallas_src>
import math

import jax
import jax.numpy as jnp
from jax.experimental import pallas as pl
from jax.experimental.pallas import tpu as pltpu

# ----------------------------- model config (small, ViT-shaped) --------------
BATCH = 2
IN_CHANS = 3
IMG = 32
PATCH = 16
EMBED_DIM = 32
DEPTH = 2
NUM_HEADS = 4
HEAD_DIM = EMBED_DIM // NUM_HEADS
MLP_HIDDEN = 4 * EMBED_DIM
NUM_CLASSES = 10
NUM_PATCHES = (IMG // PATCH) * (IMG // PATCH)
SEQ = NUM_PATCHES + 1                      # + cls token
CPP = IN_CHANS * PATCH * PATCH             # flattened patch length (768)
NC_PAD = 128                               # lane-dense padded logits width
LN_EPS = 1e-6
ATTN_SCALE = HEAD_DIM ** -0.5


# ----------------------------- in-kernel math helpers -------------------------
def _erf_f32(x):
    # Eigen / XLA float32 rational erf approximation (~2 ulp), written out
    # explicitly because Mosaic has no guaranteed native erf lowering.
    # Matches torch.nn.GELU()'s exact erf to f32 roundoff.
    x = jnp.clip(x, -3.832506856900711, 3.832506856900711)
    x2 = x * x
    p = x * (-1.60960333262415e-02 + x2 * (-2.95459980854025e-03 + x2 * (
        -7.34990630326855e-04 + x2 * (-5.69250639462346e-05 + x2 * (
            -2.10102402082508e-06 + x2 * (2.77068142495902e-08 + x2 *
                                          (-2.72614225801306e-10)))))))
    q = -1.42647390514189e-02 + x2 * (-7.37332916720468e-03 + x2 * (
        -1.68282697438203e-03 + x2 * (-2.13374055278905e-04 + x2 *
                                      (-1.45660718464996e-05))))
    return p / q


def _gelu_exact(x):
    return 0.5 * x * (1.0 + _erf_f32(x * (1.0 / math.sqrt(2.0))))


def _layernorm(x, g, b):
    # biased variance, eps inside rsqrt -> matches torch.nn.LayerNorm(eps=1e-6)
    mean = jnp.mean(x, axis=-1, keepdims=True)
    xc = x - mean
    var = jnp.mean(xc * xc, axis=-1, keepdims=True)
    return xc * jax.lax.rsqrt(var + LN_EPS) * g + b


# ----------------------------- the fused kernel --------------------------------
def _vit_forward_kernel(
    patches_ref,                 # [1, SEQ, CPP]   (row 0 zeros -> cls slot)
    patch_w_ref,                 # [CPP, D]
    addend_ref,                  # [SEQ, D] = pos_embed + (cls | patch_bias)
    n1g_ref, n1b_ref,            # [DEPTH, 1, D]
    qkvw_ref, qkvb_ref,          # [DEPTH, D, 3D], [DEPTH, 1, 3D]
    projw_ref, projb_ref,        # [DEPTH, D, D],  [DEPTH, 1, D]
    n2g_ref, n2b_ref,            # [DEPTH, 1, D]
    fc1w_ref, fc1b_ref,          # [DEPTH, D, MLP], [DEPTH, 1, MLP]
    fc2w_ref, fc2b_ref,          # [DEPTH, MLP, D], [DEPTH, 1, D]
    ng_ref, nb_ref,              # [1, D]
    headw_ref, headb_ref,        # [D, NC_PAD], [1, NC_PAD]
    o_ref,                       # [1, 1, NC_PAD]
):
    D = EMBED_DIM
    patches = patches_ref[0]                                   # [SEQ, CPP]

    # Patch embedding (== Conv2d(C, D, p, stride=p)) + cls token + pos embed.
    h = jnp.dot(patches, patch_w_ref[...],
                preferred_element_type=jnp.float32) + addend_ref[...]

    for d in range(DEPTH):
        # ---- attention sub-block: h = h + proj(attn(norm1(h))) ----
        y = _layernorm(h, n1g_ref[d], n1b_ref[d])
        qkv = jnp.dot(y, qkvw_ref[d],
                      preferred_element_type=jnp.float32) + qkvb_ref[d]
        proj_w = projw_ref[d]
        attn = jnp.zeros((SEQ, D), jnp.float32)
        for hh in range(NUM_HEADS):
            lo = hh * HEAD_DIM
            q = qkv[:, lo:lo + HEAD_DIM] * ATTN_SCALE
            k = qkv[:, D + lo:D + lo + HEAD_DIM]
            v = qkv[:, 2 * D + lo:2 * D + lo + HEAD_DIM]
            # scores = (q * scale) @ k^T  (contract head_dim, no transpose op)
            s = jax.lax.dot_general(q, k, (((1,), (1,)), ((), ())),
                                    preferred_element_type=jnp.float32)
            s = s - jnp.max(s, axis=-1, keepdims=True)
            p = jnp.exp(s)
            p = p * pl.reciprocal(jnp.sum(p, axis=-1, keepdims=True),
                                  approx=True)
            o_h = jnp.dot(p, v, preferred_element_type=jnp.float32)   # [SEQ, dh]
            # head concat folded into the output projection
            attn = attn + jnp.dot(o_h, proj_w[lo:lo + HEAD_DIM, :],
                                  preferred_element_type=jnp.float32)
        h = h + attn + projb_ref[d]

        # ---- MLP sub-block: h = h + fc2(gelu(fc1(norm2(h)))) ----
        y = _layernorm(h, n2g_ref[d], n2b_ref[d])
        z = jnp.dot(y, fc1w_ref[d],
                    preferred_element_type=jnp.float32) + fc1b_ref[d]
        z = _gelu_exact(z)
        z = jnp.dot(z, fc2w_ref[d],
                    preferred_element_type=jnp.float32) + fc2b_ref[d]
        h = h + z

    # final LayerNorm + classification head on the cls token (row 0)
    h = _layernorm(h, ng_ref[...], nb_ref[...])
    cls = h[0:1, :]
    logits = jnp.dot(cls, headw_ref[...],
                     preferred_element_type=jnp.float32) + headb_ref[...]
    o_ref[0] = logits.astype(o_ref.dtype)


def _resident_spec(arr):
    # Full-array block whose index never changes -> weight stays resident in VMEM.
    zeros = (0,) * arr.ndim
    return pl.BlockSpec(arr.shape, lambda b, _z=zeros: _z)


def vit_forward(x, packed):
    B, C, H, W = x.shape                    # NCHW, like the PyTorch module
    p = PATCH
    nh, nw = H // p, W // p

    # Patch extraction in (c, ph, pw) order to match the flattened conv weight.
    patches = (x.reshape(B, C, nh, p, nw, p)
                 .transpose(0, 2, 4, 1, 3, 5)
                 .reshape(B, nh * nw, C * p * p))
    # Prepend a zero row per image: the cls-token slot.  Its embedding comes
    # entirely from the precomputed additive term (cls_token + pos_embed[0]).
    patches_ext = jnp.pad(patches, ((0, 0), (1, 0), (0, 0)))

    weights = [
        packed["patch_w"], packed["addend"],
        packed["n1g"], packed["n1b"],
        packed["qkv_w"], packed["qkv_b"],
        packed["proj_w"], packed["proj_b"],
        packed["n2g"], packed["n2b"],
        packed["fc1_w"], packed["fc1_b"],
        packed["fc2_w"], packed["fc2_b"],
        packed["norm_g"], packed["norm_b"],
        packed["head_w"], packed["head_b"],
    ]
    in_specs = [pl.BlockSpec((1, SEQ, CPP), lambda b: (b, 0, 0))]
    in_specs += [_resident_spec(w) for w in weights]

    out = pl.pallas_call(
        _vit_forward_kernel,
        out_shape=jax.ShapeDtypeStruct((B, 1, NC_PAD), jnp.float32),
        grid=(B,),
        in_specs=in_specs,
        out_specs=pl.BlockSpec((1, 1, NC_PAD), lambda b: (b, 0, 0)),
        compiler_params=pltpu.CompilerParams(
            dimension_semantics=("parallel",)),
    )(patches_ext, *weights)
    # slice the lane-dense padded logits back to NUM_CLASSES
    return out.reshape(B, NC_PAD)[:, :NUM_CLASSES]


# ----------------------------- parameters ------------------------------------
def init_params(key):
    def nrm(k, shape, scale=0.02):
        return (scale * jax.random.normal(k, shape)).astype(jnp.float32)

    keys = iter(jax.random.split(key, 64))
    params = {
        # conv weight [D, C, p, p] flattened (C, ph, pw) -> [C*p*p, D]
        "patch_w": nrm(next(keys), (CPP, EMBED_DIM)),
        "patch_b": jnp.zeros((EMBED_DIM,), jnp.float32),
        "cls_token": nrm(next(keys), (1, 1, EMBED_DIM)),
        "pos_embed": nrm(next(keys), (1, SEQ, EMBED_DIM)),
        "norm_g": jnp.ones((EMBED_DIM,), jnp.float32),
        "norm_b": jnp.zeros((EMBED_DIM,), jnp.float32),
        "head_w": nrm(next(keys), (EMBED_DIM, NUM_CLASSES)),
        "head_b": jnp.zeros((NUM_CLASSES,), jnp.float32),
        "blocks": [],
    }
    for _ in range(DEPTH):
        blk = {
            "norm1_g": jnp.ones((EMBED_DIM,), jnp.float32),
            "norm1_b": jnp.zeros((EMBED_DIM,), jnp.float32),
            "qkv_w": nrm(next(keys), (EMBED_DIM, 3 * EMBED_DIM)),
            "qkv_b": jnp.zeros((3 * EMBED_DIM,), jnp.float32),
            "proj_w": nrm(next(keys), (EMBED_DIM, EMBED_DIM)),
            "proj_b": jnp.zeros((EMBED_DIM,), jnp.float32),
            "norm2_g": jnp.ones((EMBED_DIM,), jnp.float32),
            "norm2_b": jnp.zeros((EMBED_DIM,), jnp.float32),
            "fc1_w": nrm(next(keys), (EMBED_DIM, MLP_HIDDEN)),
            "fc1_b": jnp.zeros((MLP_HIDDEN,), jnp.float32),
            "fc2_w": nrm(next(keys), (MLP_HIDDEN, EMBED_DIM)),
            "fc2_b": jnp.zeros((EMBED_DIM,), jnp.float32),
        }
        params["blocks"].append(blk)
    return params


def pack_params(params):
    """Repack into the fused-kernel layout: per-type weights stacked over depth,
    biases/norm params as [DEPTH, 1, N], head padded to a lane-dense 128
    columns, and cls-token / pos-embed / patch bias folded into one additive
    [SEQ, D] term.  Done once, outside the kernel."""
    blocks = params["blocks"]

    def stack(name):
        return jnp.stack([b[name] for b in blocks], axis=0)

    addend = params["pos_embed"][0] + jnp.concatenate(
        [params["cls_token"][0, 0][None, :],
         jnp.broadcast_to(params["patch_b"], (NUM_PATCHES, EMBED_DIM))],
        axis=0)
    head_w = jnp.pad(params["head_w"], ((0, 0), (0, NC_PAD - NUM_CLASSES)))
    head_b = jnp.pad(params["head_b"], (0, NC_PAD - NUM_CLASSES))[None, :]

    return {
        "patch_w": params["patch_w"],
        "addend": addend,
        "n1g": stack("norm1_g")[:, None, :],
        "n1b": stack("norm1_b")[:, None, :],
        "qkv_w": stack("qkv_w"),
        "qkv_b": stack("qkv_b")[:, None, :],
        "proj_w": stack("proj_w"),
        "proj_b": stack("proj_b")[:, None, :],
        "n2g": stack("norm2_g")[:, None, :],
        "n2b": stack("norm2_b")[:, None, :],
        "fc1_w": stack("fc1_w"),
        "fc1_b": stack("fc1_b")[:, None, :],
        "fc2_w": stack("fc2_w"),
        "fc2_b": stack("fc2_b")[:, None, :],
        "norm_g": params["norm_g"][None, :],
        "norm_b": params["norm_b"][None, :],
        "head_w": head_w,
        "head_b": head_b,
    }


# ----------------------------- main -------------------------------------------
if __name__ == "__main__":
    key = jax.random.PRNGKey(0)
    k_x, k_p = jax.random.split(key)
    x = jax.random.normal(k_x, (BATCH, IN_CHANS, IMG, IMG), dtype=jnp.float32)
    params = init_params(k_p)
    packed = pack_params(params)

    fwd = jax.jit(vit_forward)
    logits = fwd(x, packed)
    logits = jax.block_until_ready(logits)
    assert logits.shape == (BATCH, NUM_CLASSES)
    assert bool(jnp.all(jnp.isfinite(logits)))
    print("KERNEL_OK")
</pallas_src>

<mosaic_0001>
module attributes {stable_mosaic.version = 11 : i64} {
  func.func @_vit_forward_kernel(%arg0: i32, %arg1: memref<1x5x768xf32, #tpu.memory_space<vmem>>, %arg2: memref<768x32xf32, #tpu.memory_space<vmem>>, %arg3: memref<5x32xf32, #tpu.memory_space<vmem>>, %arg4: memref<2x1x32xf32, #tpu.memory_space<vmem>>, %arg5: memref<2x1x32xf32, #tpu.memory_space<vmem>>, %arg6: memref<2x32x96xf32, #tpu.memory_space<vmem>>, %arg7: memref<2x1x96xf32, #tpu.memory_space<vmem>>, %arg8: memref<2x32x32xf32, #tpu.memory_space<vmem>>, %arg9: memref<2x1x32xf32, #tpu.memory_space<vmem>>, %arg10: memref<2x1x32xf32, #tpu.memory_space<vmem>>, %arg11: memref<2x1x32xf32, #tpu.memory_space<vmem>>, %arg12: memref<2x32x128xf32, #tpu.memory_space<vmem>>, %arg13: memref<2x1x128xf32, #tpu.memory_space<vmem>>, %arg14: memref<2x128x32xf32, #tpu.memory_space<vmem>>, %arg15: memref<2x1x32xf32, #tpu.memory_space<vmem>>, %arg16: memref<1x32xf32, #tpu.memory_space<vmem>>, %arg17: memref<1x32xf32, #tpu.memory_space<vmem>>, %arg18: memref<32x128xf32, #tpu.memory_space<vmem>>, %arg19: memref<1x128xf32, #tpu.memory_space<vmem>>, %arg20: memref<1x1x128xf32, #tpu.memory_space<vmem>>) attributes {dimension_semantics = [#tpu.dimension_semantics<parallel>], iteration_bounds = array<i64: 2>, scalar_prefetch = 0 : i64, scratch_operands = 0 : i64, tpu.core_type = #tpu.core_type<tc>, window_params = [{transform_indices = @transform_0, window_bounds = array<i64: 1, 5, 768>}, {pipeline_mode = #tpu.pipeline_mode<synchronous>, transform_indices = @transform_1, window_bounds = array<i64: 768, 32>}, {pipeline_mode = #tpu.pipeline_mode<synchronous>, transform_indices = @transform_2, window_bounds = array<i64: 5, 32>}, {pipeline_mode = #tpu.pipeline_mode<synchronous>, transform_indices = @transform_3, window_bounds = array<i64: 2, 1, 32>}, {pipeline_mode = #tpu.pipeline_mode<synchronous>, transform_indices = @transform_4, window_bounds = array<i64: 2, 1, 32>}, {pipeline_mode = #tpu.pipeline_mode<synchronous>, transform_indices = @transform_5, window_bounds = array<i64: 2, 32, 96>}, {pipeline_mode = #tpu.pipeline_mode<synchronous>, transform_indices = @transform_6, window_bounds = array<i64: 2, 1, 96>}, {pipeline_mode = #tpu.pipeline_mode<synchronous>, transform_indices = @transform_7, window_bounds = array<i64: 2, 32, 32>}, {pipeline_mode = #tpu.pipeline_mode<synchronous>, transform_indices = @transform_8, window_bounds = array<i64: 2, 1, 32>}, {pipeline_mode = #tpu.pipeline_mode<synchronous>, transform_indices = @transform_9, window_bounds = array<i64: 2, 1, 32>}, {pipeline_mode = #tpu.pipeline_mode<synchronous>, transform_indices = @transform_10, window_bounds = array<i64: 2, 1, 32>}, {pipeline_mode = #tpu.pipeline_mode<synchronous>, transform_indices = @transform_11, window_bounds = array<i64: 2, 32, 128>}, {pipeline_mode = #tpu.pipeline_mode<synchronous>, transform_indices = @transform_12, window_bounds = array<i64: 2, 1, 128>}, {pipeline_mode = #tpu.pipeline_mode<synchronous>, transform_indices = @transform_13, window_bounds = array<i64: 2, 128, 32>}, {pipeline_mode = #tpu.pipeline_mode<synchronous>, transform_indices = @transform_14, window_bounds = array<i64: 2, 1, 32>}, {pipeline_mode = #tpu.pipeline_mode<synchronous>, transform_indices = @transform_15, window_bounds = array<i64: 1, 32>}, {pipeline_mode = #tpu.pipeline_mode<synchronous>, transform_indices = @transform_16, window_bounds = array<i64: 1, 32>}, {pipeline_mode = #tpu.pipeline_mode<synchronous>, transform_indices = @transform_17, window_bounds = array<i64: 32, 128>}, {pipeline_mode = #tpu.pipeline_mode<synchronous>, transform_indices = @transform_18, window_bounds = array<i64: 1, 128>}, {transform_indices = @transform_19, window_bounds = array<i64: 1, 1, 128>}]} {
    %c0 = arith.constant 0 : index
    %c0_0 = arith.constant 0 : index
    %c0_1 = arith.constant 0 : index
    %0 = vector.load %arg1[%c0, %c0_0, %c0_1] : memref<1x5x768xf32, #tpu.memory_space<vmem>>, vector<1x5x768xf32>
    %1 = vector.shape_cast %0 : vector<1x5x768xf32> to vector<5x768xf32>
    %c0_2 = arith.constant 0 : index
    %c0_3 = arith.constant 0 : index
    %2 = vector.load %arg2[%c0_2, %c0_3] : memref<768x32xf32, #tpu.memory_space<vmem>>, vector<768x32xf32>
    %cst = arith.constant dense<0.000000e+00> : vector<5x32xf32>
    %3 = tpu.matmul %1, %2, %cst {dimension_numbers = #tpu.dot_dimension_numbers<[1], [0], [0], [1], [0, 0, 1, 1], [], []>} : vector<5x768xf32>, vector<768x32xf32>, vector<5x32xf32> -> vector<5x32xf32>
    %c0_4 = arith.constant 0 : index
    %c0_5 = arith.constant 0 : index
    %4 = vector.load %arg3[%c0_4, %c0_5] : memref<5x32xf32, #tpu.memory_space<vmem>>, vector<5x32xf32>
    %5 = arith.addf %3, %4 : vector<5x32xf32>
    %c0_6 = arith.constant 0 : index
    %c0_7 = arith.constant 0 : index
    %c0_8 = arith.constant 0 : index
    %6 = vector.load %arg4[%c0_6, %c0_7, %c0_8] : memref<2x1x32xf32, #tpu.memory_space<vmem>>, vector<1x1x32xf32>
    %7 = vector.shape_cast %6 : vector<1x1x32xf32> to vector<1x32xf32>
    %c0_9 = arith.constant 0 : index
    %c0_10 = arith.constant 0 : index
    %c0_11 = arith.constant 0 : index
    %8 = vector.load %arg5[%c0_9, %c0_10, %c0_11] : memref<2x1x32xf32, #tpu.memory_space<vmem>>, vector<1x1x32xf32>
    %9 = vector.shape_cast %8 : vector<1x1x32xf32> to vector<1x32xf32>
    %cst_12 = arith.constant dense<0.000000e+00> : vector<5xf32>
    %10 = vector.multi_reduction <add>, %5, %cst_12 [1] : vector<5x32xf32> to vector<5xf32>
    %11 = vector.shape_cast %10 : vector<5xf32> to vector<5x1xf32>
    %cst_13 = arith.constant 3.200000e+01 : f32
    %12 = vector.broadcast %cst_13 : f32 to vector<5x1xf32>
    %13 = arith.divf %11, %12 : vector<5x1xf32>
    %14 = vector.broadcast %13 : vector<5x1xf32> to vector<5x32xf32>
    %15 = arith.subf %5, %14 : vector<5x32xf32>
    %16 = arith.mulf %15, %15 : vector<5x32xf32>
    %cst_14 = arith.constant dense<0.000000e+00> : vector<5xf32>
    %17 = vector.multi_reduction <add>, %16, %cst_14 [1] : vector<5x32xf32> to vector<5xf32>
    %18 = vector.shape_cast %17 : vector<5xf32> to vector<5x1xf32>
    %cst_15 = arith.constant 3.200000e+01 : f32
    %19 = vector.broadcast %cst_15 : f32 to vector<5x1xf32>
    %20 = arith.divf %18, %19 : vector<5x1xf32>
    %cst_16 = arith.constant 9.99999997E-7 : f32
    %21 = vector.broadcast %cst_16 : f32 to vector<5x1xf32>
    %22 = arith.addf %20, %21 : vector<5x1xf32>
    %23 = math.rsqrt %22 : vector<5x1xf32>
    %24 = vector.broadcast %23 : vector<5x1xf32> to vector<5x32xf32>
    %25 = arith.mulf %15, %24 : vector<5x32xf32>
    %26 = vector.broadcast %7 : vector<1x32xf32> to vector<5x32xf32>
    %27 = arith.mulf %25, %26 : vector<5x32xf32>
    %28 = vector.broadcast %9 : vector<1x32xf32> to vector<5x32xf32>
    %29 = arith.addf %27, %28 : vector<5x32xf32>
    %c0_17 = arith.constant 0 : index
    %c0_18 = arith.constant 0 : index
    %c0_19 = arith.constant 0 : index
    %30 = vector.load %arg6[%c0_17, %c0_18, %c0_19] : memref<2x32x96xf32, #tpu.memory_space<vmem>>, vector<1x32x96xf32>
    %31 = vector.shape_cast %30 : vector<1x32x96xf32> to vector<32x96xf32>
    %cst_20 = arith.constant dense<0.000000e+00> : vector<5x96xf32>
    %32 = tpu.matmul %29, %31, %cst_20 {dimension_numbers = #tpu.dot_dimension_numbers<[1], [0], [0], [1], [0, 0, 1, 1], [], []>} : vector<5x32xf32>, vector<32x96xf32>, vector<5x96xf32> -> vector<5x96xf32>
    %c0_21 = arith.constant 0 : index
    %c0_22 = arith.constant 0 : index
    %c0_23 = arith.constant 0 : index
    %33 = vector.load %arg7[%c0_21, %c0_22, %c0_23] : memref<2x1x96xf32, #tpu.memory_space<vmem>>, vector<1x1x96xf32>
    %34 = vector.shape_cast %33 : vector<1x1x96xf32> to vector<1x96xf32>
    %35 = vector.broadcast %34 : vector<1x96xf32> to vector<5x96xf32>
    %36 = arith.addf %32, %35 : vector<5x96xf32>
    %c0_24 = arith.constant 0 : index
    %c0_25 = arith.constant 0 : index
    %c0_26 = arith.constant 0 : index
    %37 = vector.load %arg8[%c0_24, %c0_25, %c0_26] : memref<2x32x32xf32, #tpu.memory_space<vmem>>, vector<1x32x32xf32>
    %38 = vector.shape_cast %37 : vector<1x32x32xf32> to vector<32x32xf32>
    %cst_27 = arith.constant 0.000000e+00 : f32
    %39 = vector.broadcast %cst_27 : f32 to vector<5x32xf32>
    %40 = vector.extract_strided_slice %36 {offsets = [0, 0], sizes = [5, 8], strides = [1, 1]} : vector<5x96xf32> to vector<5x8xf32>
    %cst_28 = arith.constant 0.353553385 : f32
    %41 = vector.broadcast %cst_28 : f32 to vector<5x8xf32>
    %42 = arith.mulf %40, %41 : vector<5x8xf32>
    %43 = vector.extract_strided_slice %36 {offsets = [0, 32], sizes = [5, 8], strides = [1, 1]} : vector<5x96xf32> to vector<5x8xf32>
    %44 = vector.extract_strided_slice %36 {offsets = [0, 64], sizes = [5, 8], strides = [1, 1]} : vector<5x96xf32> to vector<5x8xf32>
    %cst_29 = arith.constant dense<0.000000e+00> : vector<5x5xf32>
    %45 = tpu.matmul %42, %43, %cst_29 {dimension_numbers = #tpu.dot_dimension_numbers<[1], [1], [0], [0], [0, 0, 1, 0], [], []>} : vector<5x8xf32>, vector<5x8xf32>, vector<5x5xf32> -> vector<5x5xf32>
    %cst_30 = arith.constant dense<0xFF800000> : vector<5xf32>
    %46 = vector.multi_reduction <maximumf>, %45, %cst_30 [1] : vector<5x5xf32> to vector<5xf32>
    %47 = vector.shape_cast %46 : vector<5xf32> to vector<5x1xf32>
    %48 = vector.broadcast %47 : vector<5x1xf32> to vector<5x5xf32>
    %49 = arith.subf %45, %48 : vector<5x5xf32>
    %50 = math.exp %49 : vector<5x5xf32>
    %cst_31 = arith.constant dense<0.000000e+00> : vector<5xf32>
    %51 = vector.multi_reduction <add>, %50, %cst_31 [1] : vector<5x5xf32> to vector<5xf32>
    %52 = vector.shape_cast %51 : vector<5xf32> to vector<5x1xf32>
    %53 = tpu.reciprocal %52 {approx = true} : vector<5x1xf32> -> vector<5x1xf32>
    %54 = vector.broadcast %53 : vector<5x1xf32> to vector<5x5xf32>
    %55 = arith.mulf %50, %54 : vector<5x5xf32>
    %cst_32 = arith.constant dense<0.000000e+00> : vector<5x8xf32>
    %56 = tpu.matmul %55, %44, %cst_32 {dimension_numbers = #tpu.dot_dimension_numbers<[1], [0], [0], [1], [0, 0, 1, 1], [], []>} : vector<5x5xf32>, vector<5x8xf32>, vector<5x8xf32> -> vector<5x8xf32>
    %57 = vector.extract_strided_slice %38 {offsets = [0, 0], sizes = [8, 32], strides = [1, 1]} : vector<32x32xf32> to vector<8x32xf32>
    %cst_33 = arith.constant dense<0.000000e+00> : vector<5x32xf32>
    %58 = tpu.matmul %56, %57, %cst_33 {dimension_numbers = #tpu.dot_dimension_numbers<[1], [0], [0], [1], [0, 0, 1, 1], [], []>} : vector<5x8xf32>, vector<8x32xf32>, vector<5x32xf32> -> vector<5x32xf32>
    %59 = arith.addf %39, %58 : vector<5x32xf32>
    %60 = vector.extract_strided_slice %36 {offsets = [0, 8], sizes = [5, 8], strides = [1, 1]} : vector<5x96xf32> to vector<5x8xf32>
    %cst_34 = arith.constant 0.353553385 : f32
    %61 = vector.broadcast %cst_34 : f32 to vector<5x8xf32>
    %62 = arith.mulf %60, %61 : vector<5x8xf32>
    %63 = vector.extract_strided_slice %36 {offsets = [0, 40], sizes = [5, 8], strides = [1, 1]} : vector<5x96xf32> to vector<5x8xf32>
    %64 = vector.extract_strided_slice %36 {offsets = [0, 72], sizes = [5, 8], strides = [1, 1]} : vector<5x96xf32> to vector<5x8xf32>
    %cst_35 = arith.constant dense<0.000000e+00> : vector<5x5xf32>
    %65 = tpu.matmul %62, %63, %cst_35 {dimension_numbers = #tpu.dot_dimension_numbers<[1], [1], [0], [0], [0, 0, 1, 0], [], []>} : vector<5x8xf32>, vector<5x8xf32>, vector<5x5xf32> -> vector<5x5xf32>
    %cst_36 = arith.constant dense<0xFF800000> : vector<5xf32>
    %66 = vector.multi_reduction <maximumf>, %65, %cst_36 [1] : vector<5x5xf32> to vector<5xf32>
    %67 = vector.shape_cast %66 : vector<5xf32> to vector<5x1xf32>
    %68 = vector.broadcast %67 : vector<5x1xf32> to vector<5x5xf32>
    %69 = arith.subf %65, %68 : vector<5x5xf32>
    %70 = math.exp %69 : vector<5x5xf32>
    %cst_37 = arith.constant dense<0.000000e+00> : vector<5xf32>
    %71 = vector.multi_reduction <add>, %70, %cst_37 [1] : vector<5x5xf32> to vector<5xf32>
    %72 = vector.shape_cast %71 : vector<5xf32> to vector<5x1xf32>
    %73 = tpu.reciprocal %72 {approx = true} : vector<5x1xf32> -> vector<5x1xf32>
    %74 = vector.broadcast %73 : vector<5x1xf32> to vector<5x5xf32>
    %75 = arith.mulf %70, %74 : vector<5x5xf32>
    %cst_38 = arith.constant dense<0.000000e+00> : vector<5x8xf32>
    %76 = tpu.matmul %75, %64, %cst_38 {dimension_numbers = #tpu.dot_dimension_numbers<[1], [0], [0], [1], [0, 0, 1, 1], [], []>} : vector<5x5xf32>, vector<5x8xf32>, vector<5x8xf32> -> vector<5x8xf32>
    %77 = vector.extract_strided_slice %38 {offsets = [8, 0], sizes = [8, 32], strides = [1, 1]} : vector<32x32xf32> to vector<8x32xf32>
    %cst_39 = arith.constant dense<0.000000e+00> : vector<5x32xf32>
    %78 = tpu.matmul %76, %77, %cst_39 {dimension_numbers = #tpu.dot_dimension_numbers<[1], [0], [0], [1], [0, 0, 1, 1], [], []>} : vector<5x8xf32>, vector<8x32xf32>, vector<5x32xf32> -> vector<5x32xf32>
    %79 = arith.addf %59, %78 : vector<5x32xf32>
    %80 = vector.extract_strided_slice %36 {offsets = [0, 16], sizes = [5, 8], strides = [1, 1]} : vector<5x96xf32> to vector<5x8xf32>
    %cst_40 = arith.constant 0.353553385 : f32
    %81 = vector.broadcast %cst_40 : f32 to vector<5x8xf32>
    %82 = arith.mulf %80, %81 : vector<5x8xf32>
    %83 = vector.extract_strided_slice %36 {offsets = [0, 48], sizes = [5, 8], strides = [1, 1]} : vector<5x96xf32> to vector<5x8xf32>
    %84 = vector.extract_strided_slice %36 {offsets = [0, 80], sizes = [5, 8], strides = [1, 1]} : vector<5x96xf32> to vector<5x8xf32>
    %cst_41 = arith.constant dense<0.000000e+00> : vector<5x5xf32>
    %85 = tpu.matmul %82, %83, %cst_41 {dimension_numbers = #tpu.dot_dimension_numbers<[1], [1], [0], [0], [0, 0, 1, 0], [], []>} : vector<5x8xf32>, vector<5x8xf32>, vector<5x5xf32> -> vector<5x5xf32>
    %cst_42 = arith.constant dense<0xFF800000> : vector<5xf32>
    %86 = vector.multi_reduction <maximumf>, %85, %cst_42 [1] : vector<5x5xf32> to vector<5xf32>
    %87 = vector.shape_cast %86 : vector<5xf32> to vector<5x1xf32>
    %88 = vector.broadcast %87 : vector<5x1xf32> to vector<5x5xf32>
    %89 = arith.subf %85, %88 : vector<5x5xf32>
    %90 = math.exp %89 : vector<5x5xf32>
    %cst_43 = arith.constant dense<0.000000e+00> : vector<5xf32>
    %91 = vector.multi_reduction <add>, %90, %cst_43 [1] : vector<5x5xf32> to vector<5xf32>
    %92 = vector.shape_cast %91 : vector<5xf32> to vector<5x1xf32>
    %93 = tpu.reciprocal %92 {approx = true} : vector<5x1xf32> -> vector<5x1xf32>
    %94 = vector.broadcast %93 : vector<5x1xf32> to vector<5x5xf32>
    %95 = arith.mulf %90, %94 : vector<5x5xf32>
    %cst_44 = arith.constant dense<0.000000e+00> : vector<5x8xf32>
    %96 = tpu.matmul %95, %84, %cst_44 {dimension_numbers = #tpu.dot_dimension_numbers<[1], [0], [0], [1], [0, 0, 1, 1], [], []>} : vector<5x5xf32>, vector<5x8xf32>, vector<5x8xf32> -> vector<5x8xf32>
    %97 = vector.extract_strided_slice %38 {offsets = [16, 0], sizes = [8, 32], strides = [1, 1]} : vector<32x32xf32> to vector<8x32xf32>
    %cst_45 = arith.constant dense<0.000000e+00> : vector<5x32xf32>
    %98 = tpu.matmul %96, %97, %cst_45 {dimension_numbers = #tpu.dot_dimension_numbers<[1], [0], [0], [1], [0, 0, 1, 1], [], []>} : vector<5x8xf32>, vector<8x32xf32>, vector<5x32xf32> -> vector<5x32xf32>
    %99 = arith.addf %79, %98 : vector<5x32xf32>
    %100 = vector.extract_strided_slice %36 {offsets = [0, 24], sizes = [5, 8], strides = [1, 1]} : vector<5x96xf32> to vector<5x8xf32>
    %cst_46 = arith.constant 0.353553385 : f32
    %101 = vector.broadcast %cst_46 : f32 to vector<5x8xf32>
    %102 = arith.mulf %100, %101 : vector<5x8xf32>
    %103 = vector.extract_strided_slice %36 {offsets = [0, 56], sizes = [5, 8], strides = [1, 1]} : vector<5x96xf32> to vector<5x8xf32>
    %104 = vector.extract_strided_slice %36 {offsets = [0, 88], sizes = [5, 8], strides = [1, 1]} : vector<5x96xf32> to vector<5x8xf32>
    %cst_47 = arith.constant dense<0.000000e+00> : vector<5x5xf32>
    %105 = tpu.matmul %102, %103, %cst_47 {dimension_numbers = #tpu.dot_dimension_numbers<[1], [1], [0], [0], [0, 0, 1, 0], [], []>} : vector<5x8xf32>, vector<5x8xf32>, vector<5x5xf32> -> vector<5x5xf32>
    %cst_48 = arith.constant dense<0xFF800000> : vector<5xf32>
    %106 = vector.multi_reduction <maximumf>, %105, %cst_48 [1] : vector<5x5xf32> to vector<5xf32>
    %107 = vector.shape_cast %106 : vector<5xf32> to vector<5x1xf32>
    %108 = vector.broadcast %107 : vector<5x1xf32> to vector<5x5xf32>
    %109 = arith.subf %105, %108 : vector<5x5xf32>
    %110 = math.exp %109 : vector<5x5xf32>
    %cst_49 = arith.constant dense<0.000000e+00> : vector<5xf32>
    %111 = vector.multi_reduction <add>, %110, %cst_49 [1] : vector<5x5xf32> to vector<5xf32>
    %112 = vector.shape_cast %111 : vector<5xf32> to vector<5x1xf32>
    %113 = tpu.reciprocal %112 {approx = true} : vector<5x1xf32> -> vector<5x1xf32>
    %114 = vector.broadcast %113 : vector<5x1xf32> to vector<5x5xf32>
    %115 = arith.mulf %110, %114 : vector<5x5xf32>
    %cst_50 = arith.constant dense<0.000000e+00> : vector<5x8xf32>
    %116 = tpu.matmul %115, %104, %cst_50 {dimension_numbers = #tpu.dot_dimension_numbers<[1], [0], [0], [1], [0, 0, 1, 1], [], []>} : vector<5x5xf32>, vector<5x8xf32>, vector<5x8xf32> -> vector<5x8xf32>
    %117 = vector.extract_strided_slice %38 {offsets = [24, 0], sizes = [8, 32], strides = [1, 1]} : vector<32x32xf32> to vector<8x32xf32>
    %cst_51 = arith.constant dense<0.000000e+00> : vector<5x32xf32>
    %118 = tpu.matmul %116, %117, %cst_51 {dimension_numbers = #tpu.dot_dimension_numbers<[1], [0], [0], [1], [0, 0, 1, 1], [], []>} : vector<5x8xf32>, vector<8x32xf32>, vector<5x32xf32> -> vector<5x32xf32>
    %119 = arith.addf %99, %118 : vector<5x32xf32>
    %120 = arith.addf %5, %119 : vector<5x32xf32>
    %c0_52 = arith.constant 0 : index
    %c0_53 = arith.constant 0 : index
    %c0_54 = arith.constant 0 : index
    %121 = vector.load %arg9[%c0_52, %c0_53, %c0_54] : memref<2x1x32xf32, #tpu.memory_space<vmem>>, vector<1x1x32xf32>
    %122 = vector.shape_cast %121 : vector<1x1x32xf32> to vector<1x32xf32>
    %123 = vector.broadcast %122 : vector<1x32xf32> to vector<5x32xf32>
    %124 = arith.addf %120, %123 : vector<5x32xf32>
    %c0_55 = arith.constant 0 : index
    %c0_56 = arith.constant 0 : index
    %c0_57 = arith.constant 0 : index
    %125 = vector.load %arg10[%c0_55, %c0_56, %c0_57] : memref<2x1x32xf32, #tpu.memory_space<vmem>>, vector<1x1x32xf32>
    %126 = vector.shape_cast %125 : vector<1x1x32xf32> to vector<1x32xf32>
    %c0_58 = arith.constant 0 : index
    %c0_59 = arith.constant 0 : index
    %c0_60 = arith.constant 0 : index
    %127 = vector.load %arg11[%c0_58, %c0_59, %c0_60] : memref<2x1x32xf32, #tpu.memory_space<vmem>>, vector<1x1x32xf32>
    %128 = vector.shape_cast %127 : vector<1x1x32xf32> to vector<1x32xf32>
    %cst_61 = arith.constant dense<0.000000e+00> : vector<5xf32>
    %129 = vector.multi_reduction <add>, %124, %cst_61 [1] : vector<5x32xf32> to vector<5xf32>
    %130 = vector.shape_cast %129 : vector<5xf32> to vector<5x1xf32>
    %cst_62 = arith.constant 3.200000e+01 : f32
    %131 = vector.broadcast %cst_62 : f32 to vector<5x1xf32>
    %132 = arith.divf %130, %131 : vector<5x1xf32>
    %133 = vector.broadcast %132 : vector<5x1xf32> to vector<5x32xf32>
    %134 = arith.subf %124, %133 : vector<5x32xf32>
    %135 = arith.mulf %134, %134 : vector<5x32xf32>
    %cst_63 = arith.constant dense<0.000000e+00> : vector<5xf32>
    %136 = vector.multi_reduction <add>, %135, %cst_63 [1] : vector<5x32xf32> to vector<5xf32>
    %137 = vector.shape_cast %136 : vector<5xf32> to vector<5x1xf32>
    %cst_64 = arith.constant 3.200000e+01 : f32
    %138 = vector.broadcast %cst_64 : f32 to vector<5x1xf32>
    %139 = arith.divf %137, %138 : vector<5x1xf32>
    %cst_65 = arith.constant 9.99999997E-7 : f32
    %140 = vector.broadcast %cst_65 : f32 to vector<5x1xf32>
    %141 = arith.addf %139, %140 : vector<5x1xf32>
    %142 = math.rsqrt %141 : vector<5x1xf32>
    %143 = vector.broadcast %142 : vector<5x1xf32> to vector<5x32xf32>
    %144 = arith.mulf %134, %143 : vector<5x32xf32>
    %145 = vector.broadcast %126 : vector<1x32xf32> to vector<5x32xf32>
    %146 = arith.mulf %144, %145 : vector<5x32xf32>
    %147 = vector.broadcast %128 : vector<1x32xf32> to vector<5x32xf32>
    %148 = arith.addf %146, %147 : vector<5x32xf32>
    %c0_66 = arith.constant 0 : index
    %c0_67 = arith.constant 0 : index
    %c0_68 = arith.constant 0 : index
    %149 = vector.load %arg12[%c0_66, %c0_67, %c0_68] : memref<2x32x128xf32, #tpu.memory_space<vmem>>, vector<1x32x128xf32>
    %150 = vector.shape_cast %149 : vector<1x32x128xf32> to vector<32x128xf32>
    %cst_69 = arith.constant dense<0.000000e+00> : vector<5x128xf32>
    %151 = tpu.matmul %148, %150, %cst_69 {dimension_numbers = #tpu.dot_dimension_numbers<[1], [0], [0], [1], [0, 0, 1, 1], [], []>} : vector<5x32xf32>, vector<32x128xf32>, vector<5x128xf32> -> vector<5x128xf32>
    %c0_70 = arith.constant 0 : index
    %c0_71 = arith.constant 0 : index
    %c0_72 = arith.constant 0 : index
    %152 = vector.load %arg13[%c0_70, %c0_71, %c0_72] : memref<2x1x128xf32, #tpu.memory_space<vmem>>, vector<1x1x128xf32>
    %153 = vector.shape_cast %152 : vector<1x1x128xf32> to vector<1x128xf32>
    %154 = vector.broadcast %153 : vector<1x128xf32> to vector<5x128xf32>
    %155 = arith.addf %151, %154 : vector<5x128xf32>
    %cst_73 = arith.constant 5.000000e-01 : f32
    %156 = vector.broadcast %cst_73 : f32 to vector<5x128xf32>
    %157 = arith.mulf %156, %155 : vector<5x128xf32>
    %cst_74 = arith.constant 0.707106769 : f32
    %158 = vector.broadcast %cst_74 : f32 to vector<5x128xf32>
    %159 = arith.mulf %155, %158 : vector<5x128xf32>
    %cst_75 = arith.constant -3.8325069 : f32
    %cst_76 = arith.constant 3.8325069 : f32
    %160 = vector.broadcast %cst_75 : f32 to vector<5x128xf32>
    %161 = arith.maximumf %160, %159 : vector<5x128xf32>
    %162 = vector.broadcast %cst_76 : f32 to vector<5x128xf32>
    %163 = arith.minimumf %162, %161 : vector<5x128xf32>
    %164 = arith.mulf %163, %163 : vector<5x128xf32>
    %cst_77 = arith.constant -2.72614237E-10 : f32
    %165 = vector.broadcast %cst_77 : f32 to vector<5x128xf32>
    %166 = arith.mulf %164, %165 : vector<5x128xf32>
    %cst_78 = arith.constant 2.77068146E-8 : f32
    %167 = vector.broadcast %cst_78 : f32 to vector<5x128xf32>
    %168 = arith.addf %167, %166 : vector<5x128xf32>
    %169 = arith.mulf %164, %168 : vector<5x128xf32>
    %cst_79 = arith.constant -2.10102394E-6 : f32
    %170 = vector.broadcast %cst_79 : f32 to vector<5x128xf32>
    %171 = arith.addf %170, %169 : vector<5x128xf32>
    %172 = arith.mulf %164, %171 : vector<5x128xf32>
    %cst_80 = arith.constant -5.69250624E-5 : f32
    %173 = vector.broadcast %cst_80 : f32 to vector<5x128xf32>
    %174 = arith.addf %173, %172 : vector<5x128xf32>
    %175 = arith.mulf %164, %174 : vector<5x128xf32>
    %cst_81 = arith.constant -7.34990637E-4 : f32
    %176 = vector.broadcast %cst_81 : f32 to vector<5x128xf32>
    %177 = arith.addf %176, %175 : vector<5x128xf32>
    %178 = arith.mulf %164, %177 : vector<5x128xf32>
    %cst_82 = arith.constant -2.954600e-03 : f32
    %179 = vector.broadcast %cst_82 : f32 to vector<5x128xf32>
    %180 = arith.addf %179, %178 : vector<5x128xf32>
    %181 = arith.mulf %164, %180 : vector<5x128xf32>
    %cst_83 = arith.constant -0.0160960332 : f32
    %182 = vector.broadcast %cst_83 : f32 to vector<5x128xf32>
    %183 = arith.addf %182, %181 : vector<5x128xf32>
    %184 = arith.mulf %163, %183 : vector<5x128xf32>
    %cst_84 = arith.constant -1.45660715E-5 : f32
    %185 = vector.broadcast %cst_84 : f32 to vector<5x128xf32>
    %186 = arith.mulf %164, %185 : vector<5x128xf32>
    %cst_85 = arith.constant -2.13374049E-4 : f32
    %187 = vector.broadcast %cst_85 : f32 to vector<5x128xf32>
    %188 = arith.addf %187, %186 : vector<5x128xf32>
    %189 = arith.mulf %164, %188 : vector<5x128xf32>
    %cst_86 = arith.constant -0.00168282702 : f32
    %190 = vector.broadcast %cst_86 : f32 to vector<5x128xf32>
    %191 = arith.addf %190, %189 : vector<5x128xf32>
    %192 = arith.mulf %164, %191 : vector<5x128xf32>
    %cst_87 = arith.constant -0.00737332925 : f32
    %193 = vector.broadcast %cst_87 : f32 to vector<5x128xf32>
    %194 = arith.addf %193, %192 : vector<5x128xf32>
    %195 = arith.mulf %164, %194 : vector<5x128xf32>
    %cst_88 = arith.constant -0.0142647391 : f32
    %196 = vector.broadcast %cst_88 : f32 to vector<5x128xf32>
    %197 = arith.addf %196, %195 : vector<5x128xf32>
    %198 = arith.divf %184, %197 : vector<5x128xf32>
    %cst_89 = arith.constant 1.000000e+00 : f32
    %199 = vector.broadcast %cst_89 : f32 to vector<5x128xf32>
    %200 = arith.addf %199, %198 : vector<5x128xf32>
    %201 = arith.mulf %157, %200 : vector<5x128xf32>
    %c0_90 = arith.constant 0 : index
    %c0_91 = arith.constant 0 : index
    %c0_92 = arith.constant 0 : index
    %202 = vector.load %arg14[%c0_90, %c0_91, %c0_92] : memref<2x128x32xf32, #tpu.memory_space<vmem>>, vector<1x128x32xf32>
    %203 = vector.shape_cast %202 : vector<1x128x32xf32> to vector<128x32xf32>
    %cst_93 = arith.constant dense<0.000000e+00> : vector<5x32xf32>
    %204 = tpu.matmul %201, %203, %cst_93 {dimension_numbers = #tpu.dot_dimension_numbers<[1], [0], [0], [1], [0, 0, 1, 1], [], []>} : vector<5x128xf32>, vector<128x32xf32>, vector<5x32xf32> -> vector<5x32xf32>
    %c0_94 = arith.constant 0 : index
    %c0_95 = arith.constant 0 : index
    %c0_96 = arith.constant 0 : index
    %205 = vector.load %arg15[%c0_94, %c0_95, %c0_96] : memref<2x1x32xf32, #tpu.memory_space<vmem>>, vector<1x1x32xf32>
    %206 = vector.shape_cast %205 : vector<1x1x32xf32> to vector<1x32xf32>
    %207 = vector.broadcast %206 : vector<1x32xf32> to vector<5x32xf32>
    %208 = arith.addf %204, %207 : vector<5x32xf32>
    %209 = arith.addf %124, %208 : vector<5x32xf32>
    %c1 = arith.constant 1 : index
    %c0_97 = arith.constant 0 : index
    %c0_98 = arith.constant 0 : index
    %210 = vector.load %arg4[%c1, %c0_97, %c0_98] : memref<2x1x32xf32, #tpu.memory_space<vmem>>, vector<1x1x32xf32>
    %211 = vector.shape_cast %210 : vector<1x1x32xf32> to vector<1x32xf32>
    %c1_99 = arith.constant 1 : index
    %c0_100 = arith.constant 0 : index
    %c0_101 = arith.constant 0 : index
    %212 = vector.load %arg5[%c1_99, %c0_100, %c0_101] : memref<2x1x32xf32, #tpu.memory_space<vmem>>, vector<1x1x32xf32>
    %213 = vector.shape_cast %212 : vector<1x1x32xf32> to vector<1x32xf32>
    %cst_102 = arith.constant dense<0.000000e+00> : vector<5xf32>
    %214 = vector.multi_reduction <add>, %209, %cst_102 [1] : vector<5x32xf32> to vector<5xf32>
    %215 = vector.shape_cast %214 : vector<5xf32> to vector<5x1xf32>
    %cst_103 = arith.constant 3.200000e+01 : f32
    %216 = vector.broadcast %cst_103 : f32 to vector<5x1xf32>
    %217 = arith.divf %215, %216 : vector<5x1xf32>
    %218 = vector.broadcast %217 : vector<5x1xf32> to vector<5x32xf32>
    %219 = arith.subf %209, %218 : vector<5x32xf32>
    %220 = arith.mulf %219, %219 : vector<5x32xf32>
    %cst_104 = arith.constant dense<0.000000e+00> : vector<5xf32>
    %221 = vector.multi_reduction <add>, %220, %cst_104 [1] : vector<5x32xf32> to vector<5xf32>
    %222 = vector.shape_cast %221 : vector<5xf32> to vector<5x1xf32>
    %cst_105 = arith.constant 3.200000e+01 : f32
    %223 = vector.broadcast %cst_105 : f32 to vector<5x1xf32>
    %224 = arith.divf %222, %223 : vector<5x1xf32>
    %cst_106 = arith.constant 9.99999997E-7 : f32
    %225 = vector.broadcast %cst_106 : f32 to vector<5x1xf32>
    %226 = arith.addf %224, %225 : vector<5x1xf32>
    %227 = math.rsqrt %226 : vector<5x1xf32>
    %228 = vector.broadcast %227 : vector<5x1xf32> to vector<5x32xf32>
    %229 = arith.mulf %219, %228 : vector<5x32xf32>
    %230 = vector.broadcast %211 : vector<1x32xf32> to vector<5x32xf32>
    %231 = arith.mulf %229, %230 : vector<5x32xf32>
    %232 = vector.broadcast %213 : vector<1x32xf32> to vector<5x32xf32>
    %233 = arith.addf %231, %232 : vector<5x32xf32>
    %c1_107 = arith.constant 1 : index
    %c0_108 = arith.constant 0 : index
    %c0_109 = arith.constant 0 : index
    %234 = vector.load %arg6[%c1_107, %c0_108, %c0_109] : memref<2x32x96xf32, #tpu.memory_space<vmem>>, vector<1x32x96xf32>
    %235 = vector.shape_cast %234 : vector<1x32x96xf32> to vector<32x96xf32>
    %cst_110 = arith.constant dense<0.000000e+00> : vector<5x96xf32>
    %236 = tpu.matmul %233, %235, %cst_110 {dimension_numbers = #tpu.dot_dimension_numbers<[1], [0], [0], [1], [0, 0, 1, 1], [], []>} : vector<5x32xf32>, vector<32x96xf32>, vector<5x96xf32> -> vector<5x96xf32>
    %c1_111 = arith.constant 1 : index
    %c0_112 = arith.constant 0 : index
    %c0_113 = arith.constant 0 : index
    %237 = vector.load %arg7[%c1_111, %c0_112, %c0_113] : memref<2x1x96xf32, #tpu.memory_space<vmem>>, vector<1x1x96xf32>
    %238 = vector.shape_cast %237 : vector<1x1x96xf32> to vector<1x96xf32>
    %239 = vector.broadcast %238 : vector<1x96xf32> to vector<5x96xf32>
    %240 = arith.addf %236, %239 : vector<5x96xf32>
    %c1_114 = arith.constant 1 : index
    %c0_115 = arith.constant 0 : index
    %c0_116 = arith.constant 0 : index
    %241 = vector.load %arg8[%c1_114, %c0_115, %c0_116] : memref<2x32x32xf32, #tpu.memory_space<vmem>>, vector<1x32x32xf32>
    %242 = vector.shape_cast %241 : vector<1x32x32xf32> to vector<32x32xf32>
    %cst_117 = arith.constant 0.000000e+00 : f32
    %243 = vector.broadcast %cst_117 : f32 to vector<5x32xf32>
    %244 = vector.extract_strided_slice %240 {offsets = [0, 0], sizes = [5, 8], strides = [1, 1]} : vector<5x96xf32> to vector<5x8xf32>
    %cst_118 = arith.constant 0.353553385 : f32
    %245 = vector.broadcast %cst_118 : f32 to vector<5x8xf32>
    %246 = arith.mulf %244, %245 : vector<5x8xf32>
    %247 = vector.extract_strided_slice %240 {offsets = [0, 32], sizes = [5, 8], strides = [1, 1]} : vector<5x96xf32> to vector<5x8xf32>
    %248 = vector.extract_strided_slice %240 {offsets = [0, 64], sizes = [5, 8], strides = [1, 1]} : vector<5x96xf32> to vector<5x8xf32>
    %cst_119 = arith.constant dense<0.000000e+00> : vector<5x5xf32>
    %249 = tpu.matmul %246, %247, %cst_119 {dimension_numbers = #tpu.dot_dimension_numbers<[1], [1], [0], [0], [0, 0, 1, 0], [], []>} : vector<5x8xf32>, vector<5x8xf32>, vector<5x5xf32> -> vector<5x5xf32>
    %cst_120 = arith.constant dense<0xFF800000> : vector<5xf32>
    %250 = vector.multi_reduction <maximumf>, %249, %cst_120 [1] : vector<5x5xf32> to vector<5xf32>
    %251 = vector.shape_cast %250 : vector<5xf32> to vector<5x1xf32>
    %252 = vector.broadcast %251 : vector<5x1xf32> to vector<5x5xf32>
    %253 = arith.subf %249, %252 : vector<5x5xf32>
    %254 = math.exp %253 : vector<5x5xf32>
    %cst_121 = arith.constant dense<0.000000e+00> : vector<5xf32>
    %255 = vector.multi_reduction <add>, %254, %cst_121 [1] : vector<5x5xf32> to vector<5xf32>
    %256 = vector.shape_cast %255 : vector<5xf32> to vector<5x1xf32>
    %257 = tpu.reciprocal %256 {approx = true} : vector<5x1xf32> -> vector<5x1xf32>
    %258 = vector.broadcast %257 : vector<5x1xf32> to vector<5x5xf32>
    %259 = arith.mulf %254, %258 : vector<5x5xf32>
    %cst_122 = arith.constant dense<0.000000e+00> : vector<5x8xf32>
    %260 = tpu.matmul %259, %248, %cst_122 {dimension_numbers = #tpu.dot_dimension_numbers<[1], [0], [0], [1], [0, 0, 1, 1], [], []>} : vector<5x5xf32>, vector<5x8xf32>, vector<5x8xf32> -> vector<5x8xf32>
    %261 = vector.extract_strided_slice %242 {offsets = [0, 0], sizes = [8, 32], strides = [1, 1]} : vector<32x32xf32> to vector<8x32xf32>
    %cst_123 = arith.constant dense<0.000000e+00> : vector<5x32xf32>
    %262 = tpu.matmul %260, %261, %cst_123 {dimension_numbers = #tpu.dot_dimension_numbers<[1], [0], [0], [1], [0, 0, 1, 1], [], []>} : vector<5x8xf32>, vector<8x32xf32>, vector<5x32xf32> -> vector<5x32xf32>
    %263 = arith.addf %243, %262 : vector<5x32xf32>
    %264 = vector.extract_strided_slice %240 {offsets = [0, 8], sizes = [5, 8], strides = [1, 1]} : vector<5x96xf32> to vector<5x8xf32>
    %cst_124 = arith.constant 0.353553385 : f32
    %265 = vector.broadcast %cst_124 : f32 to vector<5x8xf32>
    %266 = arith.mulf %264, %265 : vector<5x8xf32>
    %267 = vector.extract_strided_slice %240 {offsets = [0, 40], sizes = [5, 8], strides = [1, 1]} : vector<5x96xf32> to vector<5x8xf32>
    %268 = vector.extract_strided_slice %240 {offsets = [0, 72], sizes = [5, 8], strides = [1, 1]} : vector<5x96xf32> to vector<5x8xf32>
    %cst_125 = arith.constant dense<0.000000e+00> : vector<5x5xf32>
    %269 = tpu.matmul %266, %267, %cst_125 {dimension_numbers = #tpu.dot_dimension_numbers<[1], [1], [0], [0], [0, 0, 1, 0], [], []>} : vector<5x8xf32>, vector<5x8xf32>, vector<5x5xf32> -> vector<5x5xf32>
    %cst_126 = arith.constant dense<0xFF800000> : vector<5xf32>
    %270 = vector.multi_reduction <maximumf>, %269, %cst_126 [1] : vector<5x5xf32> to vector<5xf32>
    %271 = vector.shape_cast %270 : vector<5xf32> to vector<5x1xf32>
    %272 = vector.broadcast %271 : vector<5x1xf32> to vector<5x5xf32>
    %273 = arith.subf %269, %272 : vector<5x5xf32>
    %274 = math.exp %273 : vector<5x5xf32>
    %cst_127 = arith.constant dense<0.000000e+00> : vector<5xf32>
    %275 = vector.multi_reduction <add>, %274, %cst_127 [1] : vector<5x5xf32> to vector<5xf32>
    %276 = vector.shape_cast %275 : vector<5xf32> to vector<5x1xf32>
    %277 = tpu.reciprocal %276 {approx = true} : vector<5x1xf32> -> vector<5x1xf32>
    %278 = vector.broadcast %277 : vector<5x1xf32> to vector<5x5xf32>
    %279 = arith.mulf %274, %278 : vector<5x5xf32>
    %cst_128 = arith.constant dense<0.000000e+00> : vector<5x8xf32>
    %280 = tpu.matmul %279, %268, %cst_128 {dimension_numbers = #tpu.dot_dimension_numbers<[1], [0], [0], [1], [0, 0, 1, 1], [], []>} : vector<5x5xf32>, vector<5x8xf32>, vector<5x8xf32> -> vector<5x8xf32>
    %281 = vector.extract_strided_slice %242 {offsets = [8, 0], sizes = [8, 32], strides = [1, 1]} : vector<32x32xf32> to vector<8x32xf32>
    %cst_129 = arith.constant dense<0.000000e+00> : vector<5x32xf32>
    %282 = tpu.matmul %280, %281, %cst_129 {dimension_numbers = #tpu.dot_dimension_numbers<[1], [0], [0], [1], [0, 0, 1, 1], [], []>} : vector<5x8xf32>, vector<8x32xf32>, vector<5x32xf32> -> vector<5x32xf32>
    %283 = arith.addf %263, %282 : vector<5x32xf32>
    %284 = vector.extract_strided_slice %240 {offsets = [0, 16], sizes = [5, 8], strides = [1, 1]} : vector<5x96xf32> to vector<5x8xf32>
    %cst_130 = arith.constant 0.353553385 : f32
    %285 = vector.broadcast %cst_130 : f32 to vector<5x8xf32>
    %286 = arith.mulf %284, %285 : vector<5x8xf32>
    %287 = vector.extract_strided_slice %240 {offsets = [0, 48], sizes = [5, 8], strides = [1, 1]} : vector<5x96xf32> to vector<5x8xf32>
    %288 = vector.extract_strided_slice %240 {offsets = [0, 80], sizes = [5, 8], strides = [1, 1]} : vector<5x96xf32> to vector<5x8xf32>
    %cst_131 = arith.constant dense<0.000000e+00> : vector<5x5xf32>
    %289 = tpu.matmul %286, %287, %cst_131 {dimension_numbers = #tpu.dot_dimension_numbers<[1], [1], [0], [0], [0, 0, 1, 0], [], []>} : vector<5x8xf32>, vector<5x8xf32>, vector<5x5xf32> -> vector<5x5xf32>
    %cst_132 = arith.constant dense<0xFF800000> : vector<5xf32>
    %290 = vector.multi_reduction <maximumf>, %289, %cst_132 [1] : vector<5x5xf32> to vector<5xf32>
    %291 = vector.shape_cast %290 : vector<5xf32> to vector<5x1xf32>
    %292 = vector.broadcast %291 : vector<5x1xf32> to vector<5x5xf32>
    %293 = arith.subf %289, %292 : vector<5x5xf32>
    %294 = math.exp %293 : vector<5x5xf32>
    %cst_133 = arith.constant dense<0.000000e+00> : vector<5xf32>
    %295 = vector.multi_reduction <add>, %294, %cst_133 [1] : vector<5x5xf32> to vector<5xf32>
    %296 = vector.shape_cast %295 : vector<5xf32> to vector<5x1xf32>
    %297 = tpu.reciprocal %296 {approx = true} : vector<5x1xf32> -> vector<5x1xf32>
    %298 = vector.broadcast %297 : vector<5x1xf32> to vector<5x5xf32>
    %299 = arith.mulf %294, %298 : vector<5x5xf32>
    %cst_134 = arith.constant dense<0.000000e+00> : vector<5x8xf32>
    %300 = tpu.matmul %299, %288, %cst_134 {dimension_numbers = #tpu.dot_dimension_numbers<[1], [0], [0], [1], [0, 0, 1, 1], [], []>} : vector<5x5xf32>, vector<5x8xf32>, vector<5x8xf32> -> vector<5x8xf32>
    %301 = vector.extract_strided_slice %242 {offsets = [16, 0], sizes = [8, 32], strides = [1, 1]} : vector<32x32xf32> to vector<8x32xf32>
    %cst_135 = arith.constant dense<0.000000e+00> : vector<5x32xf32>
    %302 = tpu.matmul %300, %301, %cst_135 {dimension_numbers = #tpu.dot_dimension_numbers<[1], [0], [0], [1], [0, 0, 1, 1], [], []>} : vector<5x8xf32>, vector<8x32xf32>, vector<5x32xf32> -> vector<5x32xf32>
    %303 = arith.addf %283, %302 : vector<5x32xf32>
    %304 = vector.extract_strided_slice %240 {offsets = [0, 24], sizes = [5, 8], strides = [1, 1]} : vector<5x96xf32> to vector<5x8xf32>
    %cst_136 = arith.constant 0.353553385 : f32
    %305 = vector.broadcast %cst_136 : f32 to vector<5x8xf32>
    %306 = arith.mulf %304, %305 : vector<5x8xf32>
    %307 = vector.extract_strided_slice %240 {offsets = [0, 56], sizes = [5, 8], strides = [1, 1]} : vector<5x96xf32> to vector<5x8xf32>
    %308 = vector.extract_strided_slice %240 {offsets = [0, 88], sizes = [5, 8], strides = [1, 1]} : vector<5x96xf32> to vector<5x8xf32>
    %cst_137 = arith.constant dense<0.000000e+00> : vector<5x5xf32>
    %309 = tpu.matmul %306, %307, %cst_137 {dimension_numbers = #tpu.dot_dimension_numbers<[1], [1], [0], [0], [0, 0, 1, 0], [], []>} : vector<5x8xf32>, vector<5x8xf32>, vector<5x5xf32> -> vector<5x5xf32>
    %cst_138 = arith.constant dense<0xFF800000> : vector<5xf32>
    %310 = vector.multi_reduction <maximumf>, %309, %cst_138 [1] : vector<5x5xf32> to vector<5xf32>
    %311 = vector.shape_cast %310 : vector<5xf32> to vector<5x1xf32>
    %312 = vector.broadcast %311 : vector<5x1xf32> to vector<5x5xf32>
    %313 = arith.subf %309, %312 : vector<5x5xf32>
    %314 = math.exp %313 : vector<5x5xf32>
    %cst_139 = arith.constant dense<0.000000e+00> : vector<5xf32>
    %315 = vector.multi_reduction <add>, %314, %cst_139 [1] : vector<5x5xf32> to vector<5xf32>
    %316 = vector.shape_cast %315 : vector<5xf32> to vector<5x1xf32>
    %317 = tpu.reciprocal %316 {approx = true} : vector<5x1xf32> -> vector<5x1xf32>
    %318 = vector.broadcast %317 : vector<5x1xf32> to vector<5x5xf32>
    %319 = arith.mulf %314, %318 : vector<5x5xf32>
    %cst_140 = arith.constant dense<0.000000e+00> : vector<5x8xf32>
    %320 = tpu.matmul %319, %308, %cst_140 {dimension_numbers = #tpu.dot_dimension_numbers<[1], [0], [0], [1], [0, 0, 1, 1], [], []>} : vector<5x5xf32>, vector<5x8xf32>, vector<5x8xf32> -> vector<5x8xf32>
    %321 = vector.extract_strided_slice %242 {offsets = [24, 0], sizes = [8, 32], strides = [1, 1]} : vector<32x32xf32> to vector<8x32xf32>
    %cst_141 = arith.constant dense<0.000000e+00> : vector<5x32xf32>
    %322 = tpu.matmul %320, %321, %cst_141 {dimension_numbers = #tpu.dot_dimension_numbers<[1], [0], [0], [1], [0, 0, 1, 1], [], []>} : vector<5x8xf32>, vector<8x32xf32>, vector<5x32xf32> -> vector<5x32xf32>
    %323 = arith.addf %303, %322 : vector<5x32xf32>
    %324 = arith.addf %209, %323 : vector<5x32xf32>
    %c1_142 = arith.constant 1 : index
    %c0_143 = arith.constant 0 : index
    %c0_144 = arith.constant 0 : index
    %325 = vector.load %arg9[%c1_142, %c0_143, %c0_144] : memref<2x1x32xf32, #tpu.memory_space<vmem>>, vector<1x1x32xf32>
    %326 = vector.shape_cast %325 : vector<1x1x32xf32> to vector<1x32xf32>
    %327 = vector.broadcast %326 : vector<1x32xf32> to vector<5x32xf32>
    %328 = arith.addf %324, %327 : vector<5x32xf32>
    %c1_145 = arith.constant 1 : index
    %c0_146 = arith.constant 0 : index
    %c0_147 = arith.constant 0 : index
    %329 = vector.load %arg10[%c1_145, %c0_146, %c0_147] : memref<2x1x32xf32, #tpu.memory_space<vmem>>, vector<1x1x32xf32>
    %330 = vector.shape_cast %329 : vector<1x1x32xf32> to vector<1x32xf32>
    %c1_148 = arith.constant 1 : index
    %c0_149 = arith.constant 0 : index
    %c0_150 = arith.constant 0 : index
    %331 = vector.load %arg11[%c1_148, %c0_149, %c0_150] : memref<2x1x32xf32, #tpu.memory_space<vmem>>, vector<1x1x32xf32>
    %332 = vector.shape_cast %331 : vector<1x1x32xf32> to vector<1x32xf32>
    %cst_151 = arith.constant dense<0.000000e+00> : vector<5xf32>
    %333 = vector.multi_reduction <add>, %328, %cst_151 [1] : vector<5x32xf32> to vector<5xf32>
    %334 = vector.shape_cast %333 : vector<5xf32> to vector<5x1xf32>
    %cst_152 = arith.constant 3.200000e+01 : f32
    %335 = vector.broadcast %cst_152 : f32 to vector<5x1xf32>
    %336 = arith.divf %334, %335 : vector<5x1xf32>
    %337 = vector.broadcast %336 : vector<5x1xf32> to vector<5x32xf32>
    %338 = arith.subf %328, %337 : vector<5x32xf32>
    %339 = arith.mulf %338, %338 : vector<5x32xf32>
    %cst_153 = arith.constant dense<0.000000e+00> : vector<5xf32>
    %340 = vector.multi_reduction <add>, %339, %cst_153 [1] : vector<5x32xf32> to vector<5xf32>
    %341 = vector.shape_cast %340 : vector<5xf32> to vector<5x1xf32>
    %cst_154 = arith.constant 3.200000e+01 : f32
    %342 = vector.broadcast %cst_154 : f32 to vector<5x1xf32>
    %343 = arith.divf %341, %342 : vector<5x1xf32>
    %cst_155 = arith.constant 9.99999997E-7 : f32
    %344 = vector.broadcast %cst_155 : f32 to vector<5x1xf32>
    %345 = arith.addf %343, %344 : vector<5x1xf32>
    %346 = math.rsqrt %345 : vector<5x1xf32>
    %347 = vector.broadcast %346 : vector<5x1xf32> to vector<5x32xf32>
    %348 = arith.mulf %338, %347 : vector<5x32xf32>
    %349 = vector.broadcast %330 : vector<1x32xf32> to vector<5x32xf32>
    %350 = arith.mulf %348, %349 : vector<5x32xf32>
    %351 = vector.broadcast %332 : vector<1x32xf32> to vector<5x32xf32>
    %352 = arith.addf %350, %351 : vector<5x32xf32>
    %c1_156 = arith.constant 1 : index
    %c0_157 = arith.constant 0 : index
    %c0_158 = arith.constant 0 : index
    %353 = vector.load %arg12[%c1_156, %c0_157, %c0_158] : memref<2x32x128xf32, #tpu.memory_space<vmem>>, vector<1x32x128xf32>
    %354 = vector.shape_cast %353 : vector<1x32x128xf32> to vector<32x128xf32>
    %cst_159 = arith.constant dense<0.000000e+00> : vector<5x128xf32>
    %355 = tpu.matmul %352, %354, %cst_159 {dimension_numbers = #tpu.dot_dimension_numbers<[1], [0], [0], [1], [0, 0, 1, 1], [], []>} : vector<5x32xf32>, vector<32x128xf32>, vector<5x128xf32> -> vector<5x128xf32>
    %c1_160 = arith.constant 1 : index
    %c0_161 = arith.constant 0 : index
    %c0_162 = arith.constant 0 : index
    %356 = vector.load %arg13[%c1_160, %c0_161, %c0_162] : memref<2x1x128xf32, #tpu.memory_space<vmem>>, vector<1x1x128xf32>
    %357 = vector.shape_cast %356 : vector<1x1x128xf32> to vector<1x128xf32>
    %358 = vector.broadcast %357 : vector<1x128xf32> to vector<5x128xf32>
    %359 = arith.addf %355, %358 : vector<5x128xf32>
    %cst_163 = arith.constant 5.000000e-01 : f32
    %360 = vector.broadcast %cst_163 : f32 to vector<5x128xf32>
    %361 = arith.mulf %360, %359 : vector<5x128xf32>
    %cst_164 = arith.constant 0.707106769 : f32
    %362 = vector.broadcast %cst_164 : f32 to vector<5x128xf32>
    %363 = arith.mulf %359, %362 : vector<5x128xf32>
    %cst_165 = arith.constant -3.8325069 : f32
    %cst_166 = arith.constant 3.8325069 : f32
    %364 = vector.broadcast %cst_165 : f32 to vector<5x128xf32>
    %365 = arith.maximumf %364, %363 : vector<5x128xf32>
    %366 = vector.broadcast %cst_166 : f32 to vector<5x128xf32>
    %367 = arith.minimumf %366, %365 : vector<5x128xf32>
    %368 = arith.mulf %367, %367 : vector<5x128xf32>
    %cst_167 = arith.constant -2.72614237E-10 : f32
    %369 = vector.broadcast %cst_167 : f32 to vector<5x128xf32>
    %370 = arith.mulf %368, %369 : vector<5x128xf32>
    %cst_168 = arith.constant 2.77068146E-8 : f32
    %371 = vector.broadcast %cst_168 : f32 to vector<5x128xf32>
    %372 = arith.addf %371, %370 : vector<5x128xf32>
    %373 = arith.mulf %368, %372 : vector<5x128xf32>
    %cst_169 = arith.constant -2.10102394E-6 : f32
    %374 = vector.broadcast %cst_169 : f32 to vector<5x128xf32>
    %375 = arith.addf %374, %373 : vector<5x128xf32>
    %376 = arith.mulf %368, %375 : vector<5x128xf32>
    %cst_170 = arith.constant -5.69250624E-5 : f32
    %377 = vector.broadcast %cst_170 : f32 to vector<5x128xf32>
    %378 = arith.addf %377, %376 : vector<5x128xf32>
    %379 = arith.mulf %368, %378 : vector<5x128xf32>
    %cst_171 = arith.constant -7.34990637E-4 : f32
    %380 = vector.broadcast %cst_171 : f32 to vector<5x128xf32>
    %381 = arith.addf %380, %379 : vector<5x128xf32>
    %382 = arith.mulf %368, %381 : vector<5x128xf32>
    %cst_172 = arith.constant -2.954600e-03 : f32
    %383 = vector.broadcast %cst_172 : f32 to vector<5x128xf32>
    %384 = arith.addf %383, %382 : vector<5x128xf32>
    %385 = arith.mulf %368, %384 : vector<5x128xf32>
    %cst_173 = arith.constant -0.0160960332 : f32
    %386 = vector.broadcast %cst_173 : f32 to vector<5x128xf32>
    %387 = arith.addf %386, %385 : vector<5x128xf32>
    %388 = arith.mulf %367, %387 : vector<5x128xf32>
    %cst_174 = arith.constant -1.45660715E-5 : f32
    %389 = vector.broadcast %cst_174 : f32 to vector<5x128xf32>
    %390 = arith.mulf %368, %389 : vector<5x128xf32>
    %cst_175 = arith.constant -2.13374049E-4 : f32
    %391 = vector.broadcast %cst_175 : f32 to vector<5x128xf32>
    %392 = arith.addf %391, %390 : vector<5x128xf32>
    %393 = arith.mulf %368, %392 : vector<5x128xf32>
    %cst_176 = arith.constant -0.00168282702 : f32
    %394 = vector.broadcast %cst_176 : f32 to vector<5x128xf32>
    %395 = arith.addf %394, %393 : vector<5x128xf32>
    %396 = arith.mulf %368, %395 : vector<5x128xf32>
    %cst_177 = arith.constant -0.00737332925 : f32
    %397 = vector.broadcast %cst_177 : f32 to vector<5x128xf32>
    %398 = arith.addf %397, %396 : vector<5x128xf32>
    %399 = arith.mulf %368, %398 : vector<5x128xf32>
    %cst_178 = arith.constant -0.0142647391 : f32
    %400 = vector.broadcast %cst_178 : f32 to vector<5x128xf32>
    %401 = arith.addf %400, %399 : vector<5x128xf32>
    %402 = arith.divf %388, %401 : vector<5x128xf32>
    %cst_179 = arith.constant 1.000000e+00 : f32
    %403 = vector.broadcast %cst_179 : f32 to vector<5x128xf32>
    %404 = arith.addf %403, %402 : vector<5x128xf32>
    %405 = arith.mulf %361, %404 : vector<5x128xf32>
    %c1_180 = arith.constant 1 : index
    %c0_181 = arith.constant 0 : index
    %c0_182 = arith.constant 0 : index
    %406 = vector.load %arg14[%c1_180, %c0_181, %c0_182] : memref<2x128x32xf32, #tpu.memory_space<vmem>>, vector<1x128x32xf32>
    %407 = vector.shape_cast %406 : vector<1x128x32xf32> to vector<128x32xf32>
    %cst_183 = arith.constant dense<0.000000e+00> : vector<5x32xf32>
    %408 = tpu.matmul %405, %407, %cst_183 {dimension_numbers = #tpu.dot_dimension_numbers<[1], [0], [0], [1], [0, 0, 1, 1], [], []>} : vector<5x128xf32>, vector<128x32xf32>, vector<5x32xf32> -> vector<5x32xf32>
    %c1_184 = arith.constant 1 : index
    %c0_185 = arith.constant 0 : index
    %c0_186 = arith.constant 0 : index
    %409 = vector.load %arg15[%c1_184, %c0_185, %c0_186] : memref<2x1x32xf32, #tpu.memory_space<vmem>>, vector<1x1x32xf32>
    %410 = vector.shape_cast %409 : vector<1x1x32xf32> to vector<1x32xf32>
    %411 = vector.broadcast %410 : vector<1x32xf32> to vector<5x32xf32>
    %412 = arith.addf %408, %411 : vector<5x32xf32>
    %413 = arith.addf %328, %412 : vector<5x32xf32>
    %c0_187 = arith.constant 0 : index
    %c0_188 = arith.constant 0 : index
    %414 = vector.load %arg16[%c0_187, %c0_188] : memref<1x32xf32, #tpu.memory_space<vmem>>, vector<1x32xf32>
    %c0_189 = arith.constant 0 : index
    %c0_190 = arith.constant 0 : index
    %415 = vector.load %arg17[%c0_189, %c0_190] : memref<1x32xf32, #tpu.memory_space<vmem>>, vector<1x32xf32>
    %cst_191 = arith.constant dense<0.000000e+00> : vector<5xf32>
    %416 = vector.multi_reduction <add>, %413, %cst_191 [1] : vector<5x32xf32> to vector<5xf32>
    %417 = vector.shape_cast %416 : vector<5xf32> to vector<5x1xf32>
    %cst_192 = arith.constant 3.200000e+01 : f32
    %418 = vector.broadcast %cst_192 : f32 to vector<5x1xf32>
    %419 = arith.divf %417, %418 : vector<5x1xf32>
    %420 = vector.broadcast %419 : vector<5x1xf32> to vector<5x32xf32>
    %421 = arith.subf %413, %420 : vector<5x32xf32>
    %422 = arith.mulf %421, %421 : vector<5x32xf32>
    %cst_193 = arith.constant dense<0.000000e+00> : vector<5xf32>
    %423 = vector.multi_reduction <add>, %422, %cst_193 [1] : vector<5x32xf32> to vector<5xf32>
    %424 = vector.shape_cast %423 : vector<5xf32> to vector<5x1xf32>
    %cst_194 = arith.constant 3.200000e+01 : f32
    %425 = vector.broadcast %cst_194 : f32 to vector<5x1xf32>
    %426 = arith.divf %424, %425 : vector<5x1xf32>
    %cst_195 = arith.constant 9.99999997E-7 : f32
    %427 = vector.broadcast %cst_195 : f32 to vector<5x1xf32>
    %428 = arith.addf %426, %427 : vector<5x1xf32>
    %429 = math.rsqrt %428 : vector<5x1xf32>
    %430 = vector.broadcast %429 : vector<5x1xf32> to vector<5x32xf32>
    %431 = arith.mulf %421, %430 : vector<5x32xf32>
    %432 = vector.broadcast %414 : vector<1x32xf32> to vector<5x32xf32>
    %433 = arith.mulf %431, %432 : vector<5x32xf32>
    %434 = vector.broadcast %415 : vector<1x32xf32> to vector<5x32xf32>
    %435 = arith.addf %433, %434 : vector<5x32xf32>
    %436 = vector.extract_strided_slice %435 {offsets = [0, 0], sizes = [1, 32], strides = [1, 1]} : vector<5x32xf32> to vector<1x32xf32>
    %c0_196 = arith.constant 0 : index
    %c0_197 = arith.constant 0 : index
    %437 = vector.load %arg18[%c0_196, %c0_197] : memref<32x128xf32, #tpu.memory_space<vmem>>, vector<32x128xf32>
    %cst_198 = arith.constant dense<0.000000e+00> : vector<1x128xf32>
    %438 = tpu.matmul %436, %437, %cst_198 {dimension_numbers = #tpu.dot_dimension_numbers<[1], [0], [0], [1], [0, 0, 1, 1], [], []>} : vector<1x32xf32>, vector<32x128xf32>, vector<1x128xf32> -> vector<1x128xf32>
    %c0_199 = arith.constant 0 : index
    %c0_200 = arith.constant 0 : index
    %439 = vector.load %arg19[%c0_199, %c0_200] : memref<1x128xf32, #tpu.memory_space<vmem>>, vector<1x128xf32>
    %440 = arith.addf %438, %439 : vector<1x128xf32>
    %c0_201 = arith.constant 0 : index
    %c0_202 = arith.constant 0 : index
    %c0_203 = arith.constant 0 : index
    %441 = vector.load %arg20[%c0_201, %c0_202, %c0_203] : memref<1x1x128xf32, #tpu.memory_space<vmem>>, vector<1x1x128xf32>
    %442 = vector.shape_cast %441 : vector<1x1x128xf32> to vector<1x128xf32>
    %443 = vector.shape_cast %440 : vector<1x128xf32> to vector<1x1x128xf32>
    tpu.vector_store %arg20[%c0_201, %c0_202, %c0_203], %443 {strides = array<i32>} : memref<1x1x128xf32, #tpu.memory_space<vmem>>, vector<1x1x128xf32>,
    return
  }
  func.func @transform_0(%arg0: i32) -> (i32, i32, i32) {
    %c0_i32 = arith.constant 0 : i32
    %c0_i32_0 = arith.constant 0 : i32
    %c0_i32_1 = arith.constant 0 : i32
    return %arg0, %c0_i32, %c0_i32_0 : i32, i32, i32
  }
  func.func @transform_1(%arg0: i32) -> (i32, i32) {
    %c0_i32 = arith.constant 0 : i32
    %c0_i32_0 = arith.constant 0 : i32
    %c0_i32_1 = arith.constant 0 : i32
    return %c0_i32, %c0_i32_0 : i32, i32
  }
  func.func @transform_2(%arg0: i32) -> (i32, i32) {
    %c0_i32 = arith.constant 0 : i32
    %c0_i32_0 = arith.constant 0 : i32
    %c0_i32_1 = arith.constant 0 : i32
    return %c0_i32, %c0_i32_0 : i32, i32
  }
  func.func @transform_3(%arg0: i32) -> (i32, i32, i32) {
    %c0_i32 = arith.constant 0 : i32
    %c0_i32_0 = arith.constant 0 : i32
    %c0_i32_1 = arith.constant 0 : i32
    %c0_i32_2 = arith.constant 0 : i32
    return %c0_i32, %c0_i32_0, %c0_i32_1 : i32, i32, i32
  }
  func.func @transform_4(%arg0: i32) -> (i32, i32, i32) {
    %c0_i32 = arith.constant 0 : i32
    %c0_i32_0 = arith.constant 0 : i32
    %c0_i32_1 = arith.constant 0 : i32
    %c0_i32_2 = arith.constant 0 : i32
    return %c0_i32, %c0_i32_0, %c0_i32_1 : i32, i32, i32
  }
  func.func @transform_5(%arg0: i32) -> (i32, i32, i32) {
    %c0_i32 = arith.constant 0 : i32
    %c0_i32_0 = arith.constant 0 : i32
    %c0_i32_1 = arith.constant 0 : i32
    %c0_i32_2 = arith.constant 0 : i32
    return %c0_i32, %c0_i32_0, %c0_i32_1 : i32, i32, i32
  }
  func.func @transform_6(%arg0: i32) -> (i32, i32, i32) {
    %c0_i32 = arith.constant 0 : i32
    %c0_i32_0 = arith.constant 0 : i32
    %c0_i32_1 = arith.constant 0 : i32
    %c0_i32_2 = arith.constant 0 : i32
    return %c0_i32, %c0_i32_0, %c0_i32_1 : i32, i32, i32
  }
  func.func @transform_7(%arg0: i32) -> (i32, i32, i32) {
    %c0_i32 = arith.constant 0 : i32
    %c0_i32_0 = arith.constant 0 : i32
    %c0_i32_1 = arith.constant 0 : i32
    %c0_i32_2 = arith.constant 0 : i32
    return %c0_i32, %c0_i32_0, %c0_i32_1 : i32, i32, i32
  }
  func.func @transform_8(%arg0: i32) -> (i32, i32, i32) {
    %c0_i32 = arith.constant 0 : i32
    %c0_i32_0 = arith.constant 0 : i32
    %c0_i32_1 = arith.constant 0 : i32
    %c0_i32_2 = arith.constant 0 : i32
    return %c0_i32, %c0_i32_0, %c0_i32_1 : i32, i32, i32
  }
  func.func @transform_9(%arg0: i32) -> (i32, i32, i32) {
    %c0_i32 = arith.constant 0 : i32
    %c0_i32_0 = arith.constant 0 : i32
    %c0_i32_1 = arith.constant 0 : i32
    %c0_i32_2 = arith.constant 0 : i32
    return %c0_i32, %c0_i32_0, %c0_i32_1 : i32, i32, i32
  }
  func.func @transform_10(%arg0: i32) -> (i32, i32, i32) {
    %c0_i32 = arith.constant 0 : i32
    %c0_i32_0 = arith.constant 0 : i32
    %c0_i32_1 = arith.constant 0 : i32
    %c0_i32_2 = arith.constant 0 : i32
    return %c0_i32, %c0_i32_0, %c0_i32_1 : i32, i32, i32
  }
  func.func @transform_11(%arg0: i32) -> (i32, i32, i32) {
    %c0_i32 = arith.constant 0 : i32
    %c0_i32_0 = arith.constant 0 : i32
    %c0_i32_1 = arith.constant 0 : i32
    %c0_i32_2 = arith.constant 0 : i32
    return %c0_i32, %c0_i32_0, %c0_i32_1 : i32, i32, i32
  }
  func.func @transform_12(%arg0: i32) -> (i32, i32, i32) {
    %c0_i32 = arith.constant 0 : i32
    %c0_i32_0 = arith.constant 0 : i32
    %c0_i32_1 = arith.constant 0 : i32
    %c0_i32_2 = arith.constant 0 : i32
    return %c0_i32, %c0_i32_0, %c0_i32_1 : i32, i32, i32
  }
  func.func @transform_13(%arg0: i32) -> (i32, i32, i32) {
    %c0_i32 = arith.constant 0 : i32
    %c0_i32_0 = arith.constant 0 : i32
    %c0_i32_1 = arith.constant 0 : i32
    %c0_i32_2 = arith.constant 0 : i32
    return %c0_i32, %c0_i32_0, %c0_i32_1 : i32, i32, i32
  }
  func.func @transform_14(%arg0: i32) -> (i32, i32, i32) {
    %c0_i32 = arith.constant 0 : i32
    %c0_i32_0 = arith.constant 0 : i32
    %c0_i32_1 = arith.constant 0 : i32
    %c0_i32_2 = arith.constant 0 : i32
    return %c0_i32, %c0_i32_0, %c0_i32_1 : i32, i32, i32
  }
  func.func @transform_15(%arg0: i32) -> (i32, i32) {
    %c0_i32 = arith.constant 0 : i32
    %c0_i32_0 = arith.constant 0 : i32
    %c0_i32_1 = arith.constant 0 : i32
    return %c0_i32, %c0_i32_0 : i32, i32
  }
  func.func @transform_16(%arg0: i32) -> (i32, i32) {
    %c0_i32 = arith.constant 0 : i32
    %c0_i32_0 = arith.constant 0 : i32
    %c0_i32_1 = arith.constant 0 : i32
    return %c0_i32, %c0_i32_0 : i32, i32
  }
  func.func @transform_17(%arg0: i32) -> (i32, i32) {
    %c0_i32 = arith.constant 0 : i32
    %c0_i32_0 = arith.constant 0 : i32
    %c0_i32_1 = arith.constant 0 : i32
    return %c0_i32, %c0_i32_0 : i32, i32
  }
  func.func @transform_18(%arg0: i32) -> (i32, i32) {
    %c0_i32 = arith.constant 0 : i32
    %c0_i32_0 = arith.constant 0 : i32
    %c0_i32_1 = arith.constant 0 : i32
    return %c0_i32, %c0_i32_0 : i32, i32
  }
  func.func @transform_19(%arg0: i32) -> (i32, i32, i32) {
    %c0_i32 = arith.constant 0 : i32
    %c0_i32_0 = arith.constant 0 : i32
    %c0_i32_1 = arith.constant 0 : i32
    return %arg0, %c0_i32, %c0_i32_0 : i32, i32, i32
  }
}

</mosaic_0001>

<bundles_post_ra>
// kernel: vit_forward.1
= control target key start
LH: loop header
LB: loop body
LE: loop exit
PB: predicated region body
PF: predicated region fallthrough
CT: control target
= control target key end

     0   :  { %s3292_s0 = inlined_call_operand.vmem [shape: f32[2,5,768], index: 0, kind: input, shape index: {}]   ;;  %s3293_s1 = inlined_call_operand.vmem [shape: f32[768,32], index: 1, kind: input, shape index: {}]   ;;  %s3294_s2 = inlined_call_operand.vmem [shape: f32[5,32], index: 2, kind: input, shape index: {}]   ;;  %s3295_s3 = inlined_call_operand.vmem [shape: f32[2,1,32], index: 3, kind: input, shape index: {}]   ;;  %s3296_s4 = inlined_call_operand.vmem [shape: f32[2,1,32], index: 4, kind: input, shape index: {}]   ;;  %s3297_s5 = inlined_call_operand.vmem [shape: f32[2,32,96], index: 5, kind: input, shape index: {}]   ;;  %s3298_s6 = inlined_call_operand.vmem [shape: f32[2,1,96], index: 6, kind: input, shape index: {}]   ;;  %s3299_s7 = inlined_call_operand.vmem [shape: f32[2,32,32], index: 7, kind: input, shape index: {}]   ;;  %s3300_s8 = inlined_call_operand.vmem [shape: f32[2,1,32], index: 8, kind: input, shape index: {}]   ;;  %s3301_s9 = inlined_call_operand.vmem [shape: f32[2,1,32], index: 9, kind: input, shape index: {}]   ;;  %s3302_s10 = inlined_call_operand.vmem [shape: f32[2,1,32], index: 10, kind: input, shape index: {}]   ;;  %s3303_s11 = inlined_call_operand.vmem [shape: f32[2,32,128], index: 11, kind: input, shape index: {}]   ;;  %s3304_s12 = inlined_call_operand.vmem [shape: f32[2,1,128], index: 12, kind: input, shape index: {}]   ;;  %s3305_s13 = inlined_call_operand.vmem [shape: f32[2,128,32], index: 13, kind: input, shape index: {}]   ;;  %s3306_s14 = inlined_call_operand.vmem [shape: f32[2,1,32], index: 14, kind: input, shape index: {}]   ;;  %s3307_s15 = inlined_call_operand.vmem [shape: f32[1,32], index: 15, kind: input, shape index: {}]   ;;  %s3308_s16 = inlined_call_operand.vmem [shape: f32[1,32], index: 16, kind: input, shape index: {}]   ;;  %s3309_s17 = inlined_call_operand.vmem [shape: f32[32,128], index: 17, kind: input, shape index: {}]   ;;  %s3310_s18 = inlined_call_operand.vmem [shape: f32[1,128], index: 18, kind: input, shape index: {}]   ;;  %s3311_s19 = inlined_call_operand.hbm [shape: f32[2,1,128], index: 19, kind: output, shape index: {}]  }
   0x1   :  { %3331 = sst [smem:[#allocation12_spill]] %s3292_s0 }
   0x2   :  { %3332 = sst [smem:[#allocation13_spill]] %s3293_s1 }
   0x3   :  { %3333 = sst [smem:[#allocation14_spill]] %s3294_s2 }
   0x4   :  { %3334 = sst [smem:[#allocation15_spill]] %s3295_s3 }
   0x5   :  { %3335 = sst [smem:[#allocation16_spill]] %s3296_s4 }
   0x6   :  { %3336 = sst [smem:[#allocation17_spill]] %s3297_s5 }
   0x7   :  { %3337 = sst [smem:[#allocation18_spill]] %s3310_s18 }
   0x8   :  { %24 = vsyncpa [#allocation3], 0 }
   0x9   :  { %26 = vsyncpa [#allocation3 + $0x1], 0  ;;  %s2519_s0 = smov 0   ;;  %s2521_s30 = smov 0  }
   0xa   :  { %s2523_s20 = smov 0   ;;  %s2525_s21 = smov 0  }
   0xb LB: > { %3338 = sst [smem:[#allocation5_spill]] %s2393_s0  ;;  %s2540_s1 = sadd.s32 4294967295, %s2405_s21   ;;  %s2405_s21 = sphi %s2525_s21, %s3367_s21   ;;  %s2401_s20 = sphi %s2523_s20, %s3369_s20   ;;  %s2397_s30 = sphi %s2521_s30, %s3371_s30   ;;  %s2393_s0 = sphi %s2519_s0, %s3370_s0  }
   0xc   : > { %3339 = sst [smem:[#allocation6_spill]] %s2401_s20  ;;  %s2135_s22 = sadd.s32 4294967294, %s2405_s21  }
   0xd   : > { %3340 = sst [smem:[#allocation7_spill]] %s2405_s21  ;;  %s2544_s2 = sadd.s32 1, %s2405_s21  }
   0xe   : > { %3341 = sst [smem:[#allocation8_spill]] %s2544_s2  ;;  %s443_s23 = sadd.s32 1, %s2401_s20 }
   0xf   : > { %s440_s24 = ssub.s32 %s2405_s21, %s2544_s2  ;;  %p453_p0 = scmp.ne.s32.totalorder %s2401_s20, %s2397_s30 }
  0x10   : > { %p441_p1 = scmp.eq.s32.totalorder %s440_s24, 0  ;;  %p454_p2 = scmp.eq.s32.totalorder %s2540_s1, 1 }
  0x11   : > { %p459_p3 = scmp.ne.s32.totalorder %s2397_s30, %s2393_s0  ;;  %p460_p4 = scmp.eq.s32.totalorder %s2135_s22, 1 }
  0x12   : > { %s2555_s25 = scalar_select %p441_p1, %s2401_s20, %s443_s23  }
  0x13   : > { %p2557_p5 = por %p454_p2, %p453_p0  ;;  %p2561_p6 = por %p460_p4, %p459_p3 }
  0x14   : > { %3342 = sst [smem:[#allocation9_spill]] %s2555_s25  ;;  %p2138_p7 = scmp.ge.s32.totalorder %s2405_s21, 1 }
  0x15   : > { %s3343_s3 = scalar_select %p2557_p5, 1, 0 }
  0x16   : > { %s3345_s26 = scalar_select %p2561_p6, 1, 0 }
  0x17   : > { %3344 = sst [smem:[#allocation10_spill]] %s3343_s3  ;;  %p540_p8 = scmp.lt.s32.totalorder %s2405_s21, 3 }
  0x18   : > { %3346 = sst [smem:[#allocation11_spill]] %s3345_s26 }
  0x19   : > { %p541_p9 = pnand %p2138_p7, %p540_p8 }
  0x1a   : > { %s3347_s29 = sld [smem:[#allocation13_spill]] (!%p541_p9)  ;;  %p595_p10 = scmp.lt.s32.totalorder (!%p541_p9), %s2540_s1, 1 }
  0x1b   : > { %544 = sbr.rel (%p541_p9) target bundleno = 5478 (0x1566), region = 96  ;;  %s3348_s18 = sld [smem:[#allocation12_spill]] (!%p541_p9) }
  0x1c   : > { %s3350_s5 = sld [smem:[#allocation17_spill]] (!%p541_p9)  ;;  %s2408_s28 = smov (!%p541_p9), 96  }
  0x1d   : > { %s3351_s26 = sld [smem:[#allocation15_spill]] (!%p541_p9)  ;;  %s3330_s21 = smov (!%p541_p9), 120  }
  0x1e   : > { %s3352_s4 = sld [smem:[#allocation16_spill]] (!%p541_p9)  ;;  %s2410_s24 = smov (!%p541_p9), 88  }
  0x1f   : > { %s3329_s22 = smov (!%p541_p9), 56   ;;  %s3322_s25 = smov (!%p541_p9), 64  }
  0x20   : > { %v621_v0 = vld [vmem:[%s3347_s29 + $0x78] sm:$0xff]  ;;  %v620_v1 = vld [vmem:[%s3347_s29 + $0x70] sm:$0xff]  ;;  %v619_v4 = vld [vmem:[%s3347_s29 + $0x68] sm:$0xff]  ;;  %s2718_s0 = scalar_select %p595_p10, %s2540_s1, 1  ;;  %vm825_vm0 = vcmask 258048   ;;  %vm871_vm5 = vcmask 261120  }
  0x21   : > { %v637_v2 = vld [vmem:[%s3347_s29 + $0xf8] sm:$0xff]  ;;  %703 = vmatpush.msra.mxu0 %v621_v0  ;;  %v636_v3 = vld [vmem:[%s3347_s29 + $0xf0] sm:$0xff]  ;;  %v635_v5 = vld [vmem:[%s3347_s29 + $0xe8] sm:$0xff]  ;;  %vm903_vm6 = vcmask 64512   ;;  %vm929_vm7 = vcmask 36864   ;;  %s3323_s20 = smov 48  }
  0x22   : > { %723 = vmatpush.msra.mxu1 %v637_v2  ;;  %v618_v6 = vld [vmem:[%s3347_s29 + $0x60] sm:$0xff]  ;;  %v617_v8 = vld [vmem:[%s3347_s29 + $0x58] sm:$0xff]  ;;  %v616_v10 = vld [vmem:[%s3347_s29 + $0x50] sm:$0xff]  ;;  %s2225_s23 = smul.u32 48, %s2718_s0  ;;  %s3325_s0 = smov 112   ;;  %vm947_vm8 = vcmask 1044480  }
  0x23   : > { %704 = vmatpush.msra.mxu0 %v620_v1  ;;  %v634_v7 = vld [vmem:[%s3347_s29 + $0xe0] sm:$0xff]  ;;  %v633_v9 = vld [vmem:[%s3347_s29 + $0xd8] sm:$0xff]  ;;  %v632_v12 = vld [vmem:[%s3347_s29 + $0xd0] sm:$0xff]  ;;  %s3328_s2 = smov 80   ;;  %s3327_s27 = smov 72   ;;  %vm943_vm9 = vcmask 39936  }
  0x24   : > { %724 = vmatpush.msra.mxu1 %v636_v3  ;;  %v653_v11 = vld [vmem:[%s3347_s29 + $0x178] sm:$0xff]  ;;  %v652_v13 = vld [vmem:[%s3347_s29 + $0x170] sm:$0xff]  ;;  %v651_v15 = vld [vmem:[%s3347_s29 + $0x168] sm:$0xff]  ;;  %s2784_s3 = scalar_lea.vmem %s3348_s18, %s2225_s23  ;;  %s3349_s18 = sld [smem:[#allocation14_spill]] }
  0x25   : > { %705 = vmatpush.msra.mxu0 %v619_v4  ;;  %743 = vmatpush.msra.mxu2 %v653_v11  ;;  %v669_v14 = vld [vmem:[%s3347_s29 + $0x1f8] sm:$0xff]  ;;  %v668_v16 = vld [vmem:[%s3347_s29 + $0x1f0] sm:$0xff]  ;;  %v615_v17 = vld [vmem:[%s3347_s29 + $0x48] sm:$0xff]  ;;  %s3353_s23 = smov 120  }
  0x26   : > { %725 = vmatpush.msra.mxu1 %v635_v5  ;;  %v631_v18 = vld [vmem:[%s3347_s29 + $0xc8] sm:$0xff]  ;;  %763 = vmatpush.msra.mxu3 %v669_v14  ;;  %v650_v19 = vld [vmem:[%s3347_s29 + $0x160] sm:$0xff]  ;;  %v649_v23 = vld [vmem:[%s3347_s29 + $0x158] sm:$0xff] }
  0x27   : > { %706 = vmatpush.msra.mxu0 %v618_v6  ;;  %744 = vmatpush.msra.mxu2 %v652_v13  ;;  %v667_v20 = vld [vmem:[%s3347_s29 + $0x1e8] sm:$0xff]  ;;  %v614_v21 = vld [vmem:[%s3347_s29 + $0x40] sm:$0xff]  ;;  %v613_v25 = vld [vmem:[%s3347_s29 + $0x38] sm:$0xff] }
  0x28   : > { %726 = vmatpush.msra.mxu1 %v634_v7  ;;  %v630_v22 = vld [vmem:[%s3347_s29 + $0xc0] sm:$0xff]  ;;  %764 = vmatpush.msra.mxu3 %v668_v16  ;;  %v629_v26 = vld [vmem:[%s3347_s29 + $0xb8] sm:$0xff]  ;;  %v648_v27 = vld [vmem:[%s3347_s29 + $0x150] sm:$0xff] }
  0x29   : > { %707 = vmatpush.msra.mxu0 %v617_v8  ;;  %745 = vmatpush.msra.mxu2 %v651_v15  ;;  %v666_v24 = vld [vmem:[%s3347_s29 + $0x1e0] sm:$0xff]  ;;  %v665_v28 = vld [vmem:[%s3347_s29 + $0x1d8] sm:$0xff]  ;;  %v612_v29 = vld [vmem:[%s3347_s29 + $0x30] sm:$0xff] }
  0x2a   : > { %727 = vmatpush.msra.mxu1 %v633_v9  ;;  %765 = vmatpush.msra.mxu3 %v667_v20  ;;  %v628_v30 = vld [vmem:[%s3347_s29 + $0xb0] sm:$0xff]  ;;  %v647_v31 = vld [vmem:[%s3347_s29 + $0x148] sm:$0xff]  ;;  %v646_v35 = vld [vmem:[%s3347_s29 + $0x140] sm:$0xff] }
  0x2b   : > { %708 = vmatpush.msra.mxu0 %v616_v10  ;;  %746 = vmatpush.msra.mxu2 %v650_v19  ;;  %v664_v32 = vld [vmem:[%s3347_s29 + $0x1d0] sm:$0xff]  ;;  %v611_v33 = vld [vmem:[%s3347_s29 + $0x28] sm:$0xff]  ;;  %v610_v37 = vld [vmem:[%s3347_s29 + $0x20] sm:$0xff] }
  0x2c   : > { %728 = vmatpush.msra.mxu1 %v632_v12  ;;  %766 = vmatpush.msra.mxu3 %v666_v24  ;;  %v627_v34 = vld [vmem:[%s3347_s29 + $0xa8] sm:$0xff]  ;;  %v626_v38 = vld [vmem:[%s3347_s29 + $0xa0] sm:$0xff]  ;;  %v645_v39 = vld [vmem:[%s3347_s29 + $0x138] sm:$0xff] }
  0x2d   : > { %709 = vmatpush.msra.mxu0 %v615_v17  ;;  %747 = vmatpush.msra.mxu2 %v649_v23  ;;  %v663_v36 = vld [vmem:[%s3347_s29 + $0x1c8] sm:$0xff]  ;;  %v662_v40 = vld [vmem:[%s3347_s29 + $0x1c0] sm:$0xff]  ;;  %v609_v41 = vld [vmem:[%s3347_s29 + $0x18] sm:$0xff] }
  0x2e   : > { %729 = vmatpush.msra.mxu1 %v631_v18  ;;  %767 = vmatpush.msra.mxu3 %v665_v28  ;;  %v625_v42 = vld [vmem:[%s3347_s29 + $0x98] sm:$0xff]  ;;  %v644_v43 = vld [vmem:[%s3347_s29 + $0x130] sm:$0xff]  ;;  %v643_v47 = vld [vmem:[%s3347_s29 + $0x128] sm:$0xff] }
  0x2f   : > { %710 = vmatpush.msra.mxu0 %v614_v21  ;;  %748 = vmatpush.msra.mxu2 %v648_v27  ;;  %v661_v44 = vld [vmem:[%s3347_s29 + $0x1b8] sm:$0xff]  ;;  %v608_v45 = vld [vmem:[%s3347_s29 + $0x10] sm:$0xff]  ;;  %v607_v49 = vld [vmem:[%s3347_s29 + $0x8] sm:$0xff] }
  0x30   : > { %730 = vmatpush.msra.mxu1 %v630_v22  ;;  %768 = vmatpush.msra.mxu3 %v664_v32  ;;  %v624_v46 = vld [vmem:[%s3347_s29 + $0x90] sm:$0xff]  ;;  %v623_v50 = vld [vmem:[%s3347_s29 + $0x88] sm:$0xff]  ;;  %v642_v51 = vld [vmem:[%s3347_s29 + $0x120] sm:$0xff] }
  0x31   : > { %711 = vmatpush.msra.mxu0 %v613_v25  ;;  %749 = vmatpush.msra.mxu2 %v647_v31  ;;  %v660_v48 = vld [vmem:[%s3347_s29 + $0x1b0] sm:$0xff]  ;;  %v659_v52 = vld [vmem:[%s3347_s29 + $0x1a8] sm:$0xff]  ;;  %v606_v53 = vld [vmem:[%s3347_s29] sm:$0xff] }
  0x32   : > { %731 = vmatpush.msra.mxu1 %v629_v26  ;;  %769 = vmatpush.msra.mxu3 %v663_v36  ;;  %v622_v54 = vld [vmem:[%s3347_s29 + $0x80] sm:$0xff]  ;;  %v685_v55 = vld [vmem:[%s3347_s29 + $0x278] sm:$0xff]  ;;  %v684_v59 = vld [vmem:[%s3347_s29 + $0x270] sm:$0xff] }
  0x33   : > { %712 = vmatpush.msra.mxu0 %v612_v29  ;;  %750 = vmatpush.msra.mxu2 %v646_v35  ;;  %v701_v56 = vld [vmem:[%s3347_s29 + $0x2f8] sm:$0xff]  ;;  %v658_v58 = vld [vmem:[%s3347_s29 + $0x1a0] sm:$0xff]  ;;  %v683_v60 = vld [vmem:[%s3347_s29 + $0x268] sm:$0xff] }
  0x34   : > { %732 = vmatpush.msra.mxu1 %v628_v30  ;;  %770 = vmatpush.msra.mxu3 %v662_v40  ;;  %v641_v57 = vld [vmem:[%s3347_s29 + $0x118] sm:$0xff]  ;;  %v700_v61 = vld [vmem:[%s3347_s29 + $0x2f0] sm:$0xff]  ;;  %v699_v62 = vld [vmem:[%s3347_s29 + $0x2e8] sm:$0xff] }
  0x35   : > { %713 = vmatpush.msra.mxu0 %v611_v33  ;;  %751 = vmatpush.msra.mxu2 %v645_v39  ;;  %v640_v63 = vld [vmem:[%s3347_s29 + $0x110] sm:$0xff]  ;;  %v657_v0 = vld [vmem:[%s3347_s29 + $0x198] sm:$0xff]  ;;  %v682_v1 = vld [vmem:[%s3347_s29 + $0x260] sm:$0xff] }
  0x36   : > { %733 = vmatpush.msra.mxu1 %v627_v34  ;;  %771 = vmatpush.msra.mxu3 %v661_v44  ;;  %v698_v2 = vld [vmem:[%s3347_s29 + $0x2e0] sm:$0xff]  ;;  %v639_v3 = vld [vmem:[%s3347_s29 + $0x108] sm:$0xff]  ;;  %v656_v4 = vld [vmem:[%s3347_s29 + $0x190] sm:$0xff] }
  0x37   : > { %714 = vmatpush.msra.mxu0 %v610_v37  ;;  %752 = vmatpush.msra.mxu2 %v644_v43  ;;  %v638_v5 = vld [vmem:[%s3347_s29 + $0x100] sm:$0xff]  ;;  %v655_v6 = vld [vmem:[%s3347_s29 + $0x188] sm:$0xff]  ;;  %v681_v7 = vld [vmem:[%s3347_s29 + $0x258] sm:$0xff] }
  0x38   : > { %734 = vmatpush.msra.mxu1 %v626_v38  ;;  %772 = vmatpush.msra.mxu3 %v660_v48  ;;  %v697_v8 = vld [vmem:[%s3347_s29 + $0x2d8] sm:$0xff]  ;;  %v602_v9 = vld [vmem:[%s2784_s3 + $0x10] sm:$0x1f]  ;;  %v654_v10 = vld [vmem:[%s3347_s29 + $0x180] sm:$0xff] }
  0x39   : > { %715 = vmatpush.msra.mxu0 %v609_v41  ;;  %753 = vmatpush.msra.mxu2 %v643_v47  ;;  %v680_v11 = vld [vmem:[%s3347_s29 + $0x250] sm:$0xff]  ;;  %v600_v13 = vld [vmem:[%s2784_s3] sm:$0x1f]  ;;  %v603_v14 = vld [vmem:[%s2784_s3 + $0x18] sm:$0x1f] }
  0x3a   : > { %735 = vmatpush.msra.mxu1 %v625_v42  ;;  %773 = vmatpush.msra.mxu3 %v659_v52  ;;  %v696_v12 = vld [vmem:[%s3347_s29 + $0x2d0] sm:$0xff]  ;;  %v679_v15 = vld [vmem:[%s3347_s29 + $0x248] sm:$0xff]  ;;  %v678_v18 = vld [vmem:[%s3347_s29 + $0x240] sm:$0xff]  ;;  %v2407_v52 = vmov 32.0  }
  0x3b   : > { %716 = vmatpush.msra.mxu0 %v608_v45  ;;  %754 = vmatpush.msra.mxu2 %v642_v51  ;;  %v695_v16 = vld [vmem:[%s3347_s29 + $0x2c8] sm:$0xff]  ;;  %v694_v19 = vld [vmem:[%s3347_s29 + $0x2c0] sm:$0xff]  ;;  %v677_v20 = vld [vmem:[%s3347_s29 + $0x238] sm:$0xff]  ;;  %2295 = vrcp.f32 %v2407_v52 }
  0x3c   : > { %736 = vmatpush.msra.mxu1 %v624_v46  ;;  %774 = vmatpush.msra.mxu3 %v658_v58  ;;  %v601_v17 = vld [vmem:[%s2784_s3 + $0x8] sm:$0x1f]  ;;  %v693_v21 = vld [vmem:[%s3347_s29 + $0x2b8] sm:$0xff]  ;;  %v676_v22 = vld [vmem:[%s3347_s29 + $0x230] sm:$0xff] }
  0x3d   : > { %717 = vmatpush.msra.mxu0 %v607_v49  ;;  %755 = vmatpush.msra.mxu2 %v641_v57  ;;  %v692_v23 = vld [vmem:[%s3347_s29 + $0x2b0] sm:$0xff]  ;;  %v675_v24 = vld [vmem:[%s3347_s29 + $0x228] sm:$0xff]  ;;  %v674_v26 = vld [vmem:[%s3347_s29 + $0x220] sm:$0xff] }
  0x3e   : > { %737 = vmatpush.msra.mxu1 %v623_v50  ;;  %775 = vmatpush.msra.mxu3 %v657_v0  ;;  %v691_v25 = vld [vmem:[%s3347_s29 + $0x2a8] sm:$0xff]  ;;  %v690_v27 = vld [vmem:[%s3347_s29 + $0x2a0] sm:$0xff]  ;;  %v673_v28 = vld [vmem:[%s3347_s29 + $0x218] sm:$0xff] }
  0x3f   : > { %718 = vmatpush.msra.mxu0 %v606_v53  ;;  %756 = vmatpush.msra.mxu2 %v640_v63  ;;  %v689_v29 = vld [vmem:[%s3347_s29 + $0x298] sm:$0xff]  ;;  %v672_v30 = vld [vmem:[%s3347_s29 + $0x210] sm:$0xff]  ;;  %v671_v32 = vld [vmem:[%s3347_s29 + $0x208] sm:$0xff] }
  0x40   : > { %738 = vmatpush.msra.mxu1 %v622_v54  ;;  %776 = vmatpush.msra.mxu3 %v656_v4  ;;  %v688_v31 = vld [vmem:[%s3347_s29 + $0x290] sm:$0xff]  ;;  %v687_v33 = vld [vmem:[%s3347_s29 + $0x288] sm:$0xff]  ;;  %v670_v34 = vld [vmem:[%s3347_s29 + $0x200] sm:$0xff] }
  0x41   : > { %783 = vmatpush.msrb.mxu0 %v685_v55  ;;  %757 = vmatpush.msra.mxu2 %v639_v3  ;;  %v686_v35 = vld [vmem:[%s3347_s29 + $0x280] sm:$0xff]  ;;  %v605_v37 = vld [vmem:[%s2784_s3 + $0x28] sm:$0x1f]  ;;  %v2296_v53 = vpop.eup %2295  ;;  %v866_v0 = vld [vmem:[%s3350_s5 + $0x18] sm:$0xff] }
  0x42   : > { %803 = vmatpush.msrb.mxu1 %v701_v56  ;;  %777 = vmatpush.msra.mxu3 %v655_v6  ;;  %v604_v36 = vld [vmem:[%s2784_s3 + $0x20] sm:$0x1f]  ;;  %v830_v54 = vmul.f32 32.0, %v2296_v53  ;;  %vm834_vm1 = vweird.f32 %v2296_v53  ;;  %s3324_s3 = smov 40  }
  0x43   : > { %784 = vmatpush.msrb.mxu0 %v684_v59  ;;  %758 = vmatpush.msra.mxu2 %v638_v5  ;;  %v702_v38 = vld [vmem:[%s3349_s18] sm:$0x1f]  ;;  %s3326_s18 = smov 104  }
  0x44   : > { %804 = vmatpush.msrb.mxu1 %v700_v61  ;;  %759 = vmatmul.f32.vlgmr.msra.gmra.mxu2 %v602_v9  ;;  %v831_v55 = vsub.f32 1.0, %v830_v54  ;;  %v863_v3 = vld [vmem:[%s3350_s5] sm:$0xff] }
  0x45   : > { %785 = vmatpush.msrb.mxu0 %v683_v60  ;;  %778 = vmatpush.msra.mxu3 %v654_v10 }
  0x46   : > { %805 = vmatpush.msrb.mxu1 %v699_v62  ;;  %719 = vmatmul.f32.vlgmr.msra.gmra.mxu0 %v600_v13  ;;  %v832_v56 = vmul.f32 %v2296_v53, %v831_v55  ;;  %v2277_v13 = vld [vmem:[%s3351_s26] ss:$0 sm:$0xff] }
  0x47   : > { %786 = vmatpush.msrb.mxu0 %v682_v1  ;;  %779 = vmatmul.f32.vlgmr.msra.gmra.mxu3 %v603_v14  ;;  %v865_v1 = vld [vmem:[%s3350_s5 + $0x10] sm:$0xff] }
  0x48   : > { %806 = vmatpush.msrb.mxu1 %v698_v2  ;;  %v833_v57 = vadd.f32 %v2296_v53, %v832_v56  ;;  %887 = vmatpush.msrb.mxu2 %v866_v0  ;;  %v864_v2 = vld [vmem:[%s3350_s5 + $0x8] sm:$0xff] }
  0x49   : > { %787 = vmatpush.msrb.mxu0 %v681_v7  ;;  %739 = vmatmul.f32.vlgmr.msra.gmra.mxu1 %v601_v17 }
  0x4a   : > { %807 = vmatpush.msrb.mxu1 %v697_v8  ;;  %v2880_v58 = vsel %vm834_vm1, %v2296_v53, %v833_v57  ;;  %888 = vmatpush.msrb.mxu2 %v865_v1 }
  0x4b   : > { %788 = vmatpush.msrb.mxu0 %v680_v11 }
  0x4c   : > { %808 = vmatpush.msrb.mxu1 %v696_v12  ;;  %889 = vmatpush.msrb.mxu2 %v864_v2 }
  0x4d   : > { %789 = vmatpush.msrb.mxu0 %v679_v15 }
  0x4e   : > { %809 = vmatpush.msrb.mxu1 %v695_v16  ;;  %890 = vmatpush.msrb.mxu2 %v863_v3  ;;  %v2278_v16 = vld [vmem:[%s3352_s4] ss:$0 sm:$0xff] }
  0x4f   : > { %790 = vmatpush.msrb.mxu0 %v678_v18 }
  0x50   : > { %810 = vmatpush.msrb.mxu1 %v694_v19  ;;  %v2279_v19 = vld [vmem:[%s3298_s6] ss:$0 sm:$0xff] }
  0x51   : > { %791 = vmatpush.msrb.mxu0 %v677_v20 }
  0x52   : > { %811 = vmatpush.msrb.mxu1 %v693_v21 }
  0x53   : > { %792 = vmatpush.msrb.mxu0 %v676_v22 }
  0x54   : > { %812 = vmatpush.msrb.mxu1 %v692_v23 }
  0x55   : > { %793 = vmatpush.msrb.mxu0 %v675_v24 }
  0x56   : > { %813 = vmatpush.msrb.mxu1 %v691_v25 }
  0x57   : > { %794 = vmatpush.msrb.mxu0 %v674_v26 }
  0x58   : > { %814 = vmatpush.msrb.mxu1 %v690_v27 }
  0x59   : > { %795 = vmatpush.msrb.mxu0 %v673_v28 }
  0x5a   : > { %815 = vmatpush.msrb.mxu1 %v689_v29 }
  0x5b   : > { %796 = vmatpush.msrb.mxu0 %v672_v30 }
  0x5c   : > { %816 = vmatpush.msrb.mxu1 %v688_v31 }
  0x5d   : > { %797 = vmatpush.msrb.mxu0 %v671_v32 }
  0x5e   : > { %817 = vmatpush.msrb.mxu1 %v687_v33 }
  0x5f   : > { %798 = vmatpush.msrb.mxu0 %v670_v34 }
  0x60   : > { %818 = vmatpush.msrb.mxu1 %v686_v35  ;;  %799 = vmatmul.f32.vlgmr.msrb.gmra.mxu0 %v604_v36 }
  0x61   : > { %819 = vmatmul.f32.vlgmr.msrb.gmra.mxu1 %v605_v37 }
  0xc3   : > { %v720_v39 = vpop.f32.mrf.mxu0 }
  0xc4   : > { %v721_v40 = vadd.f32 %v720_v39, %v702_v38 }
  0xc6   : > { %v740_v41 = vpop.f32.mrf.mxu1 }
  0xc7   : > { %v741_v42 = vadd.f32 %v740_v41, %v721_v40  ;;  %v760_v43 = vpop.f32.mrf.mxu2  ;;  %v896_v40 = vld [vmem:[%s3299_s7 + $0x8] sm:$0xff] }
  0xc9   : > { %v761_v44 = vadd.f32 %v760_v43, %v741_v42 }
  0xca   : > { %v780_v45 = vpop.f32.mrf.mxu3 }
  0xcb   : > { %v781_v46 = vadd.f32 %v780_v45, %v761_v44 }
  0xdd   : > { %v800_v47 = vpop.f32.mrf.mxu0 }
  0xde   : > { %v820_v48 = vpop.f32.mrf.mxu1  ;;  %v801_v49 = vadd.f32 %v800_v47, %v781_v46  ;;  %v895_v47 = vld [vmem:[%s3299_s7] sm:$0xff] }
  0xe0   : > { %v2876_v50 = vadd.f32 %v820_v48, %v801_v49 }
  0xe2   : > { %v826_v51 = vsel %vm825_vm0, %v2876_v50, 0.0 }
  0xe3   : > { %827 = vadd.xlane.f32.xlu0 %v826_v51 }
 0x156   : > { %v828_v59 = vpop.xlane.xlu0 %827 }
 0x157   : > { %v836_v60 = vmul.f32 %v2880_v58, %v828_v59 }
 0x159   : > { %v837_v61 = vsub.f32 %v2876_v50, %v836_v60 }
 0x15b   : > { %v838_v62 = vmul.f32 %v837_v61, %v837_v61 }
 0x15d   : > { %v839_v63 = vsel %vm825_vm0, %v838_v62, 0.0 }
 0x15e   : > { %840 = vadd.xlane.f32.xlu0 %v839_v63 }
 0x1d1   : > { %v841_v4 = vpop.xlane.xlu0 %840 }
 0x1d2   : > { %v842_v5 = vmul.f32 %v841_v4, %v2880_v58 }
 0x1d4   : > { %v843_v6 = vadd.f32 1e-06, %v842_v5 }
 0x1d6   : > { %2297 = vrsqrt.f32 %v843_v6  ;;  %vm850_vm3 = vweird.f32 %v843_v6 }
 0x1dc   : > { %v2298_v7 = vpop.eup %2297 }
 0x1dd   : > { %v845_v8 = vmul.f32 %v2298_v7, %v843_v6  ;;  %vm851_vm2 = vweird.f32 %v2298_v7  ;;  %v897_v6 = vld [vmem:[%s3299_s7 + $0x10] sm:$0xff] }
 0x1de   : > { %vm852_vm4 = vmor %vm850_vm3, %vm851_vm2  ;;  %1166 = vmatpush.msra.mxu1 %v897_v6 }
 0x1df   : > { %v846_v9 = vmul.f32 %v2298_v7, %v845_v8 }
 0x1e1   : > { %v847_v10 = vmul.f32 0.5, %v846_v9 }
 0x1e3   : > { %v848_v11 = vsub.f32 1.5, %v847_v10 }
 0x1e5   : > { %v849_v12 = vmul.f32 %v2298_v7, %v848_v11 }
 0x1e7   : > { %v853_v14 = vsel %vm852_vm4, %v2298_v7, %v849_v12 }
 0x1e8   : > { %v854_v15 = vmul.f32 %v853_v14, %v837_v61 }
 0x1ea   : > { %v858_v17 = vmul.f32 %v2277_v13, %v854_v15 }
 0x1ec   : > { %v862_v18 = vadd.f32 %v2278_v16, %v858_v17 }
 0x1ee   : > { %2140 = vmatmul.msk.f32.vlgmr.msrb.gmra.mxu2 %vm871_vm5, %v862_v18 }
 0x271   : > { %v892_v20 = vpop.f32.mrf.mxu2 }
 0x272   : > { %v2908_v21 = vadd.f32 %v2279_v19, %v892_v20  ;;  %v898_v20 = vld [vmem:[%s3299_s7 + $0x18] sm:$0xff] }
 0x274   : > { %901 = vrot.lane.b32.xlu1 %v2908_v21, %s2408_s28  ;;  %v899_v22 = vmul.f32 0.35355338, %v2908_v21 }
 0x276   : > { %970 = vrot.lane.b32.xlu2 %v899_v22, %s3330_s21  ;;  %s3361_s21 = smov 40  }
 0x27c   : > { %972 = vrot.lane.b32.xlu1 %v2908_v21, %s2410_s24 }
 0x2d0   : > { %v971_v25 = vpop.permute.xlu2 %970 }
 0x2e6   : > { %v902_v23 = vpop.permute.xlu1 %901 }
 0x2e7   : > { %2141 = vmatpush.xpose.msk.msrb.mxu3 %vm903_vm6, %v902_v23 }
 0x2ea   : > { %2142 = vmatmul.msk.f32.vlgmr.msrb.gmra.mxu3 %vm903_vm6, %v899_v22 }
 0x2ee   : > { %v973_v24 = vpop.permute.xlu1 %972 }
 0x2ef   : > { %2145 = vmatpush.xpose.msk.msra.mxu3 %vm903_vm6, %v973_v24 }
 0x2f2   : > { %2146 = vmatmul.msk.f32.vlgmr.msra.gmra.mxu3 %vm903_vm6, %v971_v25 }
 0x2f3   : > { %1054 = vmatpush.msrb.mxu3 %v896_v40 }
 0x36d   : > { %v926_v26 = vpop.f32.mrf.mxu3 }
 0x36e   : > { %v930_v27 = vsel %vm929_vm7, %v926_v26, -inf }
 0x36f   : > { %931 = vmax.xlane.f32.xlu2 %v930_v27  ;;  %v2280_v27 = vld [vmem:[%s3300_s8] ss:$0 sm:$0xff] }
 0x375   : > { %v995_v28 = vpop.f32.mrf.mxu3 }
 0x376   : > { %v998_v29 = vsel %vm929_vm7, %v995_v28, -inf }
 0x377   : > { %999 = vmax.xlane.f32.xlu0 %v998_v29 }
 0x387   : > { %1009 = vrot.lane.b32.xlu2 %v2908_v21, %s3329_s22  ;;  %s2076_s22 = scalar_lea.hbm %s3311_s19, %s2540_s1 }
 0x3e2   : > { %v932_v30 = vpop.xlane.xlu2 %931 }
 0x3e3   : > { %v933_v31 = vsub.f32 %v926_v26, %v932_v30 }
 0x3e5   : > { %v934_v32 = vmul.f32 1.442695, %v933_v31 }
 0x3e7   : > { %2299 = vpow2.f32 %v934_v32 }
 0x3ea   : > { %v1000_v33 = vpop.xlane.xlu0 %999  ;;  %v1010_v48 = vpop.permute.xlu2 %1009 }
 0x3eb   : > { %v1001_v34 = vsub.f32 %v995_v28, %v1000_v33 }
 0x3ed   : > { %v2300_v35 = vpop.eup %2299  ;;  %v1002_v36 = vmul.f32 1.442695, %v1001_v34 }
 0x3ee   : > { %v936_v37 = vsel %vm929_vm7, %v2300_v35, 0.0 }
 0x3ef   : > { %2301 = vpow2.f32 %v1002_v36  ;;  %937 = vadd.xlane.f32.xlu1 %v936_v37  ;;  %v1303_v36 = vld [vmem:[%s3303_s11 + $0x18] sm:$0xff]  ;;  %v1301_v37 = vld [vmem:[%s3303_s11 + $0x8] sm:$0xff] }
 0x3f0   : > { %1323 = vmatpush.msrb.mxu1 %v1303_v36 }
 0x3f5   : > { %v2302_v38 = vpop.eup %2301 }
 0x3f6   : > { %v1004_v39 = vsel %vm929_vm7, %v2302_v38, 0.0 }
 0x3f7   : > { %1005 = vadd.xlane.f32.xlu0 %v1004_v39 }
 0x408   : > { %1082 = vrot.lane.b32.xlu1 %v899_v22, %s3325_s0  ;;  %s3357_s0 = smov 104  }
 0x40b   : > { %941 = vrot.lane.b32.xlu0 %v2908_v21, %s3322_s25  ;;  %s3355_s25 = smov 80  }
 0x410   : > { %1121 = vrot.lane.b32.xlu1 %v2908_v21, %s3323_s20  ;;  %s3356_s20 = smov 72  }
 0x413   : > { %1084 = vrot.lane.b32.xlu0 %v2908_v21, %s3328_s2 }
 0x418   : > { %1174 = vrot.lane.b32.xlu1 %v2908_v21, %s3327_s27  ;;  %s2363_s27 = scalar_lea.hbm %s3311_s19, 2 }
 0x420   : > { %1172 = vrot.lane.b32.xlu1 %v899_v22, %s3326_s18  ;;  %s3360_s18 = smov 64  }
 0x462   : > { %v938_v41 = vpop.xlane.xlu1 %937 }
 0x463   : > { %2303 = vrcp.f32 %v938_v41 }
 0x469   : > { %v2304_v43 = vpop.eup %2303 }
 0x46a   : > { %v1006_v42 = vpop.xlane.xlu0 %1005  ;;  %v940_v44 = vmul.f32 %v2304_v43, %v2300_v35 }
 0x46b   : > { %2305 = vrcp.f32 %v1006_v42 }
 0x471   : > { %v2306_v49 = vpop.eup %2305 }
 0x472   : > { %v1008_v51 = vmul.f32 %v2306_v49, %v2302_v38  ;;  %v1300_v38 = vld [vmem:[%s3303_s11] sm:$0xff] }
 0x47a   : > { %v1083_v45 = vpop.permute.xlu1 %1082 }
 0x47d   : > { %v942_v46 = vpop.permute.xlu0 %941 }
 0x47e   : > { %2143 = vmatpush.msk.msra.mxu2 %vm947_vm8, %v942_v46 }
 0x47f   : > { %2144 = vmatmul.msk.f32.vlgmr.msra.gmra.mxu2 %vm943_vm9, %v940_v44 }
 0x480   : > { %2147 = vmatpush.msk.msrb.mxu2 %vm947_vm8, %v1010_v48  ;;  %v2281_v48 = vld [vmem:[%s3301_s9] ss:$0 sm:$0xff] }
 0x482   : > { %1077 = vmatpush.msra.mxu2 %v895_v47  ;;  %v1122_v53 = vpop.permute.xlu1 %1121 }
 0x485   : > { %v1085_v52 = vpop.permute.xlu0 %1084 }
 0x486   : > { %2151 = vmatpush.xpose.msk.msra.mxu3 %vm903_vm6, %v1085_v52  ;;  %v2282_v52 = vld [vmem:[%s3302_s10] ss:$0 sm:$0xff] }
 0x487   : > { %2148 = vmatmul.msk.f32.vlgmr.msrb.gmra.mxu2 %vm943_vm9, %v1008_v51 }
 0x488   : > { %2153 = vmatpush.msk.msrb.mxu2 %vm947_vm8, %v1122_v53 }
 0x48a   : > { %v1175_v55 = vpop.permute.xlu1 %1174 }
 0x492   : > { %v1173_v5 = vpop.permute.xlu1 %1172 }
 0x502   : > { %v967_v54 = vpop.f32.mrf.mxu2 }
 0x503   : > { %2150 = vmatmul.msk.f32.vlgmr.msra.gmra.mxu2 %vm903_vm6, %v967_v54 }
 0x504   : > { %2156 = vmatpush.xpose.msk.msra.mxu2 %vm903_vm6, %v1175_v55  ;;  %v1389_v55 = vld [vmem:[%s3305_s13 + $0x78] sm:$0xff] }
 0x50a   : > { %v1033_v56 = vpop.f32.mrf.mxu2 }
 0x50b   : > { %2149 = vmatmul.msk.f32.vlgmr.msrb.gmra.mxu3 %vm903_vm6, %v1033_v56  ;;  %v1388_v56 = vld [vmem:[%s3305_s13 + $0x70] sm:$0xff] }
 0x513   : > { %2152 = vmatmul.msk.f32.vlgmr.msra.gmra.mxu3 %vm903_vm6, %v1083_v45 }
 0x586   : > { %v1079_v7 = vpop.f32.mrf.mxu2 }
 0x58e   : > { %v1056_v57 = vpop.f32.mrf.mxu3 }
 0x58f   : > { %v1080_v23 = vadd.f32 %v1079_v7, %v1056_v57  ;;  %v1387_v57 = vld [vmem:[%s3305_s13 + $0x68] sm:$0xff] }
 0x590   : > { %v1379_v7 = vld [vmem:[%s3305_s13 + $0x28] sm:$0xff] }
 0x596   : > { %v1107_v59 = vpop.f32.mrf.mxu3 }
 0x597   : > { %v1110_v60 = vsel %vm929_vm7, %v1107_v59, -inf }
 0x598   : > { %1111 = vmax.xlane.f32.xlu0 %v1110_v60  ;;  %v1385_v60 = vld [vmem:[%s3305_s13 + $0x58] sm:$0xff] }
 0x60b   : > { %v1112_v61 = vpop.xlane.xlu0 %1111 }
 0x60c   : > { %v1113_v62 = vsub.f32 %v1107_v59, %v1112_v61  ;;  %v1386_v59 = vld [vmem:[%s3305_s13 + $0x60] sm:$0xff]  ;;  %v1384_v61 = vld [vmem:[%s3305_s13 + $0x50] sm:$0xff] }
 0x60e   : > { %v1114_v63 = vmul.f32 1.442695, %v1113_v62  ;;  %v2283_v62 = vld [vmem:[%s3304_s12] ss:$0 sm:$0xff] }
 0x610   : > { %2307 = vpow2.f32 %v1114_v63  ;;  %v1383_v63 = vld [vmem:[%s3305_s13 + $0x48] sm:$0xff] }
 0x616   : > { %v2308_v0 = vpop.eup %2307 }
 0x617   : > { %v1116_v1 = vsel %vm929_vm7, %v2308_v0, 0.0 }
 0x618   : > { %1117 = vadd.xlane.f32.xlu2 %v1116_v1 }
 0x68b   : > { %v1118_v2 = vpop.xlane.xlu2 %1117 }
 0x68c   : > { %2309 = vrcp.f32 %v1118_v2 }
 0x692   : > { %v2310_v3 = vpop.eup %2309 }
 0x693   : > { %v1120_v4 = vmul.f32 %v2310_v3, %v2308_v0  ;;  %v1382_v0 = vld [vmem:[%s3305_s13 + $0x40] sm:$0xff]  ;;  %v1381_v3 = vld [vmem:[%s3305_s13 + $0x38] sm:$0xff] }
 0x695   : > { %2154 = vmatmul.msk.f32.vlgmr.msrb.gmra.mxu2 %vm943_vm9, %v1120_v4 }
 0x696   : > { %1394 = vmatpush.msrb.mxu2 %v1389_v55 }
 0x698   : > { %1395 = vmatpush.msrb.mxu2 %v1388_v56 }
 0x69a   : > { %1396 = vmatpush.msrb.mxu2 %v1387_v57 }
 0x69c   : > { %1397 = vmatpush.msrb.mxu2 %v1386_v59 }
 0x69d   : > { %2157 = vmatmul.msk.f32.vlgmr.msra.gmra.mxu2 %vm903_vm6, %v1173_v5  ;;  %v1380_v5 = vld [vmem:[%s3305_s13 + $0x30] sm:$0xff] }
 0x69e   : > { %1398 = vmatpush.msrb.mxu2 %v1385_v60 }
 0x6a0   : > { %1399 = vmatpush.msrb.mxu2 %v1384_v61  ;;  %v2168_v61 = vld [vmem:[%s3350_s5 + $0x38] sm:$0xff] }
 0x6a2   : > { %1400 = vmatpush.msrb.mxu2 %v1383_v63  ;;  %v2165_v63 = vld [vmem:[%s3350_s5 + $0x20] sm:$0xff] }
 0x6a4   : > { %1401 = vmatpush.msrb.mxu2 %v1382_v0 }
 0x6a6   : > { %1402 = vmatpush.msrb.mxu2 %v1381_v3 }
 0x6a8   : > { %1403 = vmatpush.msrb.mxu2 %v1380_v5 }
 0x6aa   : > { %1404 = vmatpush.msrb.mxu2 %v1379_v7 }
 0x718   : > { %v1145_v8 = vpop.f32.mrf.mxu2 }
 0x719   : > { %2155 = vmatmul.msk.f32.vlgmr.msra.gmra.mxu1 %vm903_vm6, %v1145_v8 }
 0x720   : > { %v1197_v9 = vpop.f32.mrf.mxu2 }
 0x721   : > { %v1200_v10 = vsel %vm929_vm7, %v1197_v9, -inf }
 0x722   : > { %1201 = vmax.xlane.f32.xlu0 %v1200_v10 }
 0x736   : > { %1211 = vrot.lane.b32.xlu0 %v2908_v21, %s3324_s3  ;;  %s3354_s3 = smov 56  }
 0x795   : > { %v1202_v11 = vpop.xlane.xlu0 %1201 }
 0x796   : > { %v1203_v12 = vsub.f32 %v1197_v9, %v1202_v11  ;;  %v1168_v22 = vpop.f32.mrf.mxu1  ;;  %v1378_v9 = vld [vmem:[%s3305_s13 + $0x20] sm:$0xff] }
 0x797   : > { %v1171_v24 = vadd.f32 %v1168_v22, %v1080_v23  ;;  %1405 = vmatpush.msrb.mxu2 %v1378_v9  ;;  %v2285_v9 = vld [vmem:[%s3351_s26 + $0x1] ss:$0 sm:$0xff] }
 0x798   : > { %v1204_v13 = vmul.f32 1.442695, %v1203_v12  ;;  %v1377_v12 = vld [vmem:[%s3305_s13 + $0x18] sm:$0xff] }
 0x799   : > { %1406 = vmatpush.msrb.mxu2 %v1377_v12  ;;  %v2286_v12 = vld [vmem:[%s3352_s4 + $0x1] ss:$0 sm:$0xff]  ;;  %s2080_s4 = sshll.u32 %s2076_s22, 4  ;;  %s2081_s4 = int_to_ptr.hbm [resolvable:$true] %s2080_s4 }
 0x79a   : > { %2311 = vpow2.f32 %v1204_v13 }
 0x7a0   : > { %v2312_v14 = vpop.eup %2311 }
 0x7a1   : > { %v1206_v15 = vsel %vm929_vm7, %v2312_v14, 0.0 }
 0x7a2   : > { %1207 = vadd.xlane.f32.xlu1 %v1206_v15  ;;  %v1376_v15 = vld [vmem:[%s3305_s13 + $0x10] sm:$0xff] }
 0x7a3   : > { %1407 = vmatpush.msrb.mxu2 %v1376_v15  ;;  %v2287_v15 = vld [vmem:[%s3298_s6 + $0x1] ss:$0 sm:$0xff] }
 0x7a8   : > { %v1212_v16 = vpop.permute.xlu0 %1211 }
 0x7a9   : > { %2158 = vmatpush.msk.msrb.mxu3 %vm947_vm8, %v1212_v16 }
 0x7ab   : > { %1256 = vmatpush.msra.mxu3 %v898_v20 }
 0x815   : > { %v1208_v17 = vpop.xlane.xlu1 %1207 }
 0x816   : > { %2313 = vrcp.f32 %v1208_v17 }
 0x81c   : > { %v2314_v18 = vpop.eup %2313 }
 0x81d   : > { %v1210_v19 = vmul.f32 %v2314_v18, %v2312_v14  ;;  %v1375_v18 = vld [vmem:[%s3305_s13 + $0x8] sm:$0xff] }
 0x81e   : > { %1408 = vmatpush.msrb.mxu2 %v1375_v18 }
 0x81f   : > { %2159 = vmatmul.msk.f32.vlgmr.msrb.gmra.mxu3 %vm943_vm9, %v1210_v19  ;;  %v1374_v19 = vld [vmem:[%s3305_s13] sm:$0xff] }
 0x820   : > { %1409 = vmatpush.msrb.mxu2 %v1374_v19  ;;  %1474 = vmatpush.msrb.mxu3 %v2168_v61 }
 0x8a2   : > { %v1235_v21 = vpop.f32.mrf.mxu3 }
 0x8a3   : > { %2160 = vmatmul.msk.f32.vlgmr.msra.gmra.mxu3 %vm903_vm6, %v1235_v21 }
 0x926   : > { %v1258_v25 = vpop.f32.mrf.mxu3 }
 0x927   : > { %v1261_v26 = vadd.f32 %v1258_v25, %v1171_v24 }
 0x929   : > { %v1262_v28 = vadd.f32 %v1261_v26, %v2876_v50  ;;  %v1302_v50 = vld [vmem:[%s3303_s11 + $0x10] sm:$0xff] }
 0x92a   : > { %1324 = vmatpush.msrb.mxu1 %v1302_v50 }
 0x92b   : > { %v2974_v29 = vadd.f32 %v2280_v27, %v1262_v28 }
 0x92c   : > { %1325 = vmatpush.msrb.mxu1 %v1301_v37 }
 0x92d   : > { %v1270_v30 = vsel %vm825_vm0, %v2974_v29, 0.0 }
 0x92e   : > { %1271 = vadd.xlane.f32.xlu2 %v1270_v30  ;;  %1326 = vmatpush.msrb.mxu1 %v1300_v38 }
 0x9a1   : > { %v1272_v31 = vpop.xlane.xlu2 %1271 }
 0x9a2   : > { %v1273_v32 = vmul.f32 %v1272_v31, %v2880_v58 }
 0x9a4   : > { %v1274_v33 = vsub.f32 %v2974_v29, %v1273_v32 }
 0x9a6   : > { %v1275_v34 = vmul.f32 %v1274_v33, %v1274_v33 }
 0x9a8   : > { %v1276_v35 = vsel %vm825_vm0, %v1275_v34, 0.0 }
 0x9a9   : > { %1277 = vadd.xlane.f32.xlu2 %v1276_v35 }
 0xa1c   : > { %v1278_v39 = vpop.xlane.xlu2 %1277 }
 0xa1d   : > { %v1279_v40 = vmul.f32 %v1278_v39, %v2880_v58 }
 0xa1f   : > { %v1280_v41 = vadd.f32 1e-06, %v1279_v40 }
 0xa21   : > { %2315 = vrsqrt.f32 %v1280_v41  ;;  %vm1287_vm11 = vweird.f32 %v1280_v41 }
 0xa27   : > { %v2316_v42 = vpop.eup %2315 }
 0xa28   : > { %v1282_v43 = vmul.f32 %v2316_v42, %v1280_v41  ;;  %vm1288_vm10 = vweird.f32 %v2316_v42 }
 0xa29   : > { %vm1289_vm12 = vmor %vm1287_vm11, %vm1288_vm10 }
 0xa2a   : > { %v1283_v44 = vmul.f32 %v2316_v42, %v1282_v43 }
 0xa2c   : > { %v1284_v45 = vmul.f32 0.5, %v1283_v44 }
 0xa2e   : > { %v1285_v46 = vsub.f32 1.5, %v1284_v45 }
 0xa30   : > { %v1286_v47 = vmul.f32 %v2316_v42, %v1285_v46 }
 0xa32   : > { %v1290_v49 = vsel %vm1289_vm12, %v2316_v42, %v1286_v47 }
 0xa33   : > { %v1291_v51 = vmul.f32 %v1290_v49, %v1274_v33  ;;  %v2284_v49 = vld [vmem:[%s3306_s14] ss:$0 sm:$0xff] }
 0xa35   : > { %v1295_v53 = vmul.f32 %v2281_v48, %v1291_v51 }
 0xa37   : > { %v1299_v54 = vadd.f32 %v2282_v52, %v1295_v53 }
 0xa39   : > { %2161 = vmatmul.msk.f32.vlgmr.msrb.gmra.mxu1 %vm871_vm5, %v1299_v54 }
 0xab6   : > { %v1328_v1 = vpop.f32.mrf.mxu1 }
 0xab7   : > { %v1329_v2 = vadd.f32 %v2283_v62, %v1328_v1  ;;  %v2166_v62 = vld [vmem:[%s3350_s5 + $0x28] sm:$0xff] }
 0xab9   : > { %v1332_v4 = vmul.f32 0.70710677, %v1329_v2  ;;  %v1331_v46 = vmul.f32 0.5, %v1329_v2 }
 0xabb   : > { %v2162_v6 = vclamps-f32 %v1332_v4, 3.832507 }
 0xabd   : > { %v1335_v8 = vmul.f32 %v2162_v6, %v2162_v6 }
 0xabf   : > { %v1336_v10 = vmul.f32 -2.7261424e-10, %v1335_v8  ;;  %v1349_v11 = vmul.f32 -1.45660715e-05, %v1335_v8 }
 0xac1   : > { %v1337_v13 = vadd.f32 2.7706815e-08, %v1336_v10  ;;  %v1350_v14 = vadd.f32 -0.00021337405, %v1349_v11 }
 0xac3   : > { %v1338_v16 = vmul.f32 %v1337_v13, %v1335_v8  ;;  %v1351_v17 = vmul.f32 %v1350_v14, %v1335_v8 }
 0xac5   : > { %v1339_v20 = vadd.f32 -2.101024e-06, %v1338_v16  ;;  %v1352_v21 = vadd.f32 -0.001682827, %v1351_v17 }
 0xac7   : > { %v1340_v22 = vmul.f32 %v1339_v20, %v1335_v8  ;;  %v1353_v23 = vmul.f32 %v1352_v21, %v1335_v8 }
 0xac9   : > { %v1341_v24 = vadd.f32 -5.6925062e-05, %v1340_v22  ;;  %v1354_v25 = vadd.f32 -0.0073733293, %v1353_v23 }
 0xacb   : > { %v1342_v26 = vmul.f32 %v1341_v24, %v1335_v8  ;;  %v1355_v27 = vmul.f32 %v1354_v25, %v1335_v8 }
 0xacd   : > { %v1343_v28 = vadd.f32 -0.00073499064, %v1342_v26  ;;  %v1356_v30 = vadd.f32 -0.014264739, %v1355_v27 }
 0xacf   : > { %v1344_v31 = vmul.f32 %v1343_v28, %v1335_v8  ;;  %2317 = vrcp.f32 %v1356_v30  ;;  %v1368_v50 = vand.u32 2147483648, %v1356_v30  ;;  %v1366_v39 = vand.u32 2147483647, %v1356_v30 }
 0xad0   : > { %vm1362_vm14 = vweird.f32 %v1356_v30 }
 0xad1   : > { %v1345_v32 = vadd.f32 -0.0029546, %v1344_v31  ;;  %v1369_v41 = vor.u32 1.1754944e-38, %v1368_v50  ;;  %vm1367_vm1 = vcmp.eq.f32.partialorder %v1366_v39, 8.507059e+37 }
 0xad3   : > { %v1346_v34 = vmul.f32 %v1345_v32, %v1335_v8 }
 0xad5   : > { %v2318_v33 = vpop.eup %2317  ;;  %v1347_v37 = vadd.f32 -0.016096033, %v1346_v34 }
 0xad6   : > { %v1358_v35 = vmul.f32 %v2318_v33, %v1356_v30  ;;  %vm1363_vm13 = vweird.f32 %v2318_v33 }
 0xad7   : > { %vm1364_vm15 = vmor %vm1362_vm14, %vm1363_vm13  ;;  %v1348_v42 = vmul.f32 %v2162_v6, %v1347_v37 }
 0xad8   : > { %v1359_v36 = vsub.f32 1.0, %v1358_v35 }
 0xada   : > { %v1360_v38 = vmul.f32 %v2318_v33, %v1359_v36 }
 0xadc   : > { %v1361_v40 = vadd.f32 %v2318_v33, %v1360_v38 }
 0xade   : > { %v1365_v43 = vsel %vm1364_vm15, %v2318_v33, %v1361_v40 }
 0xadf   : > { %v1370_v44 = vsel %vm1367_vm1, %v1369_v41, %v1365_v43 }
 0xae0   : > { %v1371_v45 = vmul.f32 %v1370_v44, %v1348_v42 }
 0xae2   : > { %v1372_v47 = vadd.f32 1.0, %v1371_v45 }
 0xae4   : > { %v1373_v48 = vmul.f32 %v1372_v47, %v1331_v46 }
 0xae6   : > { %1410 = vmatmul.f32.vlgmr.msrb.gmra.mxu2 %v1373_v48 }
 0xb69   : > { %v1411_v51 = vpop.f32.mrf.mxu2 }
 0xb6a   : > { %v1412_v52 = vadd.f32 %v2284_v49, %v1411_v51 }
 0xb6c   : > { %v3056_v53 = vadd.f32 %v1412_v52, %v2974_v29  ;;  %v2167_v29 = vld [vmem:[%s3350_s5 + $0x30] sm:$0xff] }
 0xb6d   : > { %1475 = vmatpush.msrb.mxu3 %v2167_v29 }
 0xb6e   : > { %v1419_v54 = vsel %vm825_vm0, %v3056_v53, 0.0 }
 0xb6f   : > { %1420 = vadd.xlane.f32.xlu0 %v1419_v54  ;;  %1476 = vmatpush.msrb.mxu3 %v2166_v62 }
 0xb71   : > { %1477 = vmatpush.msrb.mxu3 %v2165_v63 }
 0xbe2   : > { %v1421_v55 = vpop.xlane.xlu0 %1420 }
 0xbe3   : > { %v1422_v56 = vmul.f32 %v1421_v55, %v2880_v58 }
 0xbe5   : > { %v1423_v57 = vsub.f32 %v3056_v53, %v1422_v56 }
 0xbe7   : > { %v1424_v59 = vmul.f32 %v1423_v57, %v1423_v57 }
 0xbe9   : > { %v1425_v60 = vsel %vm825_vm0, %v1424_v59, 0.0 }
 0xbea   : > { %1426 = vadd.xlane.f32.xlu2 %v1425_v60 }
 0xc5d   : > { %v1427_v0 = vpop.xlane.xlu2 %1426 }
 0xc5e   : > { %v1428_v1 = vmul.f32 %v1427_v0, %v2880_v58 }
 0xc60   : > { %v1429_v2 = vadd.f32 1e-06, %v1428_v1  ;;  %v2172_v1 = vld [vmem:[%s3299_s7 + $0x28] sm:$0xff] }
 0xc62   : > { %2319 = vrsqrt.f32 %v1429_v2  ;;  %vm1436_vm3 = vweird.f32 %v1429_v2 }
 0xc68   : > { %v2320_v3 = vpop.eup %2319 }
 0xc69   : > { %v1431_v4 = vmul.f32 %v2320_v3, %v1429_v2  ;;  %vm1437_vm2 = vweird.f32 %v2320_v3 }
 0xc6a   : > { %vm1438_vm4 = vmor %vm1436_vm3, %vm1437_vm2 }
 0xc6b   : > { %v1432_v5 = vmul.f32 %v2320_v3, %v1431_v4 }
 0xc6d   : > { %v1433_v6 = vmul.f32 0.5, %v1432_v5 }
 0xc6f   : > { %v1434_v7 = vsub.f32 1.5, %v1433_v6 }
 0xc71   : > { %v1435_v8 = vmul.f32 %v2320_v3, %v1434_v7 }
 0xc73   : > { %v1439_v10 = vsel %vm1438_vm4, %v2320_v3, %v1435_v8  ;;  %v2171_v3 = vld [vmem:[%s3299_s7 + $0x20] sm:$0xff] }
 0xc74   : > { %v1440_v11 = vmul.f32 %v1439_v10, %v1423_v57 }
 0xc76   : > { %v1444_v13 = vmul.f32 %v2285_v9, %v1440_v11 }
 0xc78   : > { %v1448_v14 = vadd.f32 %v2286_v12, %v1444_v13  ;;  %v2173_v12 = vld [vmem:[%s3299_s7 + $0x30] sm:$0xff]  ;;  %v2174_v13 = vld [vmem:[%s3299_s7 + $0x38] sm:$0xff] }
 0xc79   : > { %1840 = vmatpush.msra.mxu2 %v2174_v13 }
 0xc7a   : > { %2170 = vmatmul.msk.f32.vlgmr.msrb.gmra.mxu3 %vm871_vm5, %v1448_v14 }
 0xcfd   : > { %v1479_v16 = vpop.f32.mrf.mxu3 }
 0xcfe   : > { %v3086_v17 = vadd.f32 %v2287_v15, %v1479_v16 }
 0xd00   : > { %1489 = vrot.lane.b32.xlu0 %v3086_v17, %s2408_s28  ;;  %1556 = vrot.lane.b32.xlu2 %v3086_v17, %s2410_s24  ;;  %v1487_v18 = vmul.f32 0.35355338, %v3086_v17  ;;  %s3358_s28 = smov 112   ;;  %s3359_s24 = smov 48  }
 0xd02   : > { %1554 = vrot.lane.b32.xlu1 %v1487_v18, %s3353_s23 }
 0xd08   : > { %1593 = vrot.lane.b32.xlu0 %v3086_v17, %s3354_s3 }
 0xd10   : > { %1668 = vrot.lane.b32.xlu0 %v3086_v17, %s3355_s25  ;;  %s3363_s25 = sld [smem:[#allocation18_spill]] }
 0xd18   : > { %1758 = vrot.lane.b32.xlu0 %v3086_v17, %s3356_s20 }
 0xd20   : > { %1756 = vrot.lane.b32.xlu0 %v1487_v18, %s3357_s0 }
 0xd5a   : > { %v1557_v19 = vpop.permute.xlu2 %1556 }
 0xd5b   : > { %2179 = vmatpush.xpose.msk.msra.mxu3 %vm903_vm6, %v1557_v19 }
 0xd5f   : > { %1661 = vmatpush.msrb.mxu3 %v2171_v3  ;;  %v2210_v3 = vld [vmem:[%s3305_s13 + $0xa8] sm:$0xff] }
 0xd72   : > { %v1490_v20 = vpop.permute.xlu0 %1489 }
 0xd73   : > { %2175 = vmatpush.xpose.msk.msra.mxu0 %vm903_vm6, %v1490_v20 }
 0xd74   : > { %v1555_v21 = vpop.permute.xlu1 %1554 }
 0xd75   : > { %2180 = vmatmul.msk.f32.vlgmr.msra.gmra.mxu3 %vm903_vm6, %v1555_v21 }
 0xd76   : > { %2176 = vmatmul.msk.f32.vlgmr.msra.gmra.mxu0 %vm903_vm6, %v1487_v18  ;;  %1750 = vmatpush.msra.mxu3 %v2173_v12 }
 0xd7a   : > { %v1594_v22 = vpop.permute.xlu0 %1593 }
 0xd7b   : > { %2181 = vmatpush.msk.msrb.mxu0 %vm947_vm8, %v1594_v22 }
 0xd82   : > { %v1669_v23 = vpop.permute.xlu0 %1668 }
 0xd83   : > { %2185 = vmatpush.xpose.msk.msra.mxu0 %vm903_vm6, %v1669_v23  ;;  %v2288_v23 = vld [vmem:[%s3300_s8 + $0x1] ss:$0 sm:$0xff] }
 0xd8a   : > { %v1759_v38 = vpop.permute.xlu0 %1758 }
 0xd92   : > { %v1757_v43 = vpop.permute.xlu0 %1756 }
 0xdf3   : > { %v1513_v32 = vpop.f32.mrf.mxu0 }
 0xdf4   : > { %v1516_v33 = vsel %vm929_vm7, %v1513_v32, -inf }
 0xdf8   : > { %v1579_v24 = vpop.f32.mrf.mxu3 }
 0xdf9   : > { %v1582_v25 = vsel %vm929_vm7, %v1579_v24, -inf }
 0xdfa   : > { %1583 = vmax.xlane.f32.xlu2 %v1582_v25 }
 0xe12   : > { %1666 = vrot.lane.b32.xlu2 %v1487_v18, %s3358_s28 }
 0xe6d   : > { %v1584_v26 = vpop.xlane.xlu2 %1583 }
 0xe6e   : > { %v1585_v27 = vsub.f32 %v1579_v24, %v1584_v26 }
 0xe70   : > { %v1586_v28 = vmul.f32 1.442695, %v1585_v27 }
 0xe72   : > { %2321 = vpow2.f32 %v1586_v28 }
 0xe75   : > { %v1667_v40 = vpop.permute.xlu2 %1666 }
 0xe78   : > { %v2322_v30 = vpop.eup %2321 }
 0xe79   : > { %v1588_v31 = vsel %vm929_vm7, %v2322_v30, 0.0 }
 0xe7a   : > { %1589 = vadd.xlane.f32.xlu1 %v1588_v31 }
 0xe82   : > { %1517 = vmax.xlane.f32.xlu1 %v1516_v33  ;;  %v2201_v33 = vld [vmem:[%s3303_s11 + $0x38] sm:$0xff] }
 0xeed   : > { %v1590_v34 = vpop.xlane.xlu1 %1589 }
 0xeee   : > { %2323 = vrcp.f32 %v1590_v34  ;;  %v2199_v34 = vld [vmem:[%s3303_s11 + $0x28] sm:$0xff] }
 0xef4   : > { %v2324_v35 = vpop.eup %2323 }
 0xef5   : > { %v1592_v36 = vmul.f32 %v2324_v35, %v2322_v30  ;;  %v1518_v50 = vpop.xlane.xlu1 %1517  ;;  %v2198_v35 = vld [vmem:[%s3303_s11 + $0x20] sm:$0xff] }
 0xef6   : > { %v1519_v37 = vsub.f32 %v1513_v32, %v1518_v50 }
 0xef7   : > { %2182 = vmatmul.msk.f32.vlgmr.msrb.gmra.mxu0 %vm943_vm9, %v1592_v36 }
 0xef8   : > { %v1520_v39 = vmul.f32 1.442695, %v1519_v37  ;;  %2190 = vmatpush.xpose.msk.msrb.mxu0 %vm903_vm6, %v1759_v38 }
 0xefa   : > { %2325 = vpow2.f32 %v1520_v39 }
 0xeff   : > { %2186 = vmatmul.msk.f32.vlgmr.msra.gmra.mxu0 %vm903_vm6, %v1667_v40 }
 0xf00   : > { %v2326_v41 = vpop.eup %2325 }
 0xf01   : > { %v1522_v42 = vsel %vm929_vm7, %v2326_v41, 0.0 }
 0xf02   : > { %1523 = vadd.xlane.f32.xlu2 %v1522_v42 }
 0xf07   : > { %2191 = vmatmul.msk.f32.vlgmr.msrb.gmra.mxu0 %vm903_vm6, %v1757_v43 }
 0xf1a   : > { %1705 = vrot.lane.b32.xlu2 %v3086_v17, %s3359_s24  ;;  %s2357_s24 = sshra.s32 %s2081_s4, 4  ;;  %s2358_s24 = int_to_ptr.hbm [resolvable:$true] %s2357_s24 }
 0xf1b   : > { %s2359_s5 = scalar_lea.hbm %s2358_s24, 1  ;;  %p2364_p0 = scmp.lt.s32.totalorder %s2358_s24, %s3311_s19 }
 0xf1c   : > { %p2360_p11 = scmp.ne.s32.totalorder %s2358_s24, %s2359_s5  ;;  %p2365_p1 = scmp.lt.s32.totalorder %s2363_s27, %s2359_s5 }
 0xf1e   : > { %p2361_p12 = pnand %p2360_p11, %p2557_p5  ;;  %p2366_p2 = por %p2365_p1, %p2364_p0 }
 0xf20   : > { %p2362_p13 = pneg %p2361_p12 }
 0xf22   : > { %p2367_p3 = pnand %p2366_p2, %p2362_p13 }
 0xf74   : > { %v1617_v44 = vpop.f32.mrf.mxu0 }
 0xf75   : > { %v1524_v61 = vpop.xlane.xlu2 %1523 }
 0xf7c   : > { %v1691_v45 = vpop.f32.mrf.mxu0 }
 0xf7d   : > { %v1694_v46 = vsel %vm929_vm7, %v1691_v45, -inf  ;;  %v1706_v2 = vpop.permute.xlu2 %1705 }
 0xf7e   : > { %1695 = vmax.xlane.f32.xlu0 %v1694_v46 }
 0xf84   : > { %v1781_v47 = vpop.f32.mrf.mxu0 }
 0xf85   : > { %v1784_v48 = vsel %vm929_vm7, %v1781_v47, -inf }
 0xf86   : > { %1785 = vmax.xlane.f32.xlu1 %v1784_v48 }
 0xf9f   : > { %1527 = vrot.lane.b32.xlu1 %v3086_v17, %s3360_s18  ;;  %s593_s18 = sand.u32 1, %s2397_s30  }
 0xfa0   : > { %s594_s20 = scalar_lea.vmem [#allocation2], %s593_s18  ;;  %s2068_s28 = scalar_lea.sflag [#allocation3], %s593_s18 }
 0xfa1   : > { %s2078_s0 = sshll.u32 %s594_s20, 4  ;;  %s2079_s0 = int_to_ptr.vmem [resolvable:$true] %s2078_s0 }
 0xff1   : > { %v1696_v49 = vpop.xlane.xlu0 %1695 }
 0xff2   : > { %v1697_v51 = vsub.f32 %v1691_v45, %v1696_v49 }
 0xff4   : > { %v1698_v52 = vmul.f32 1.442695, %v1697_v51  ;;  %v2220_v51 = vld [vmem:[%s3305_s13 + $0xf8] sm:$0xff] }
 0xff5   : > { %1985 = vmatpush.msra.mxu0 %v2220_v51 }
 0xff6   : > { %2327 = vpow2.f32 %v1698_v52  ;;  %v2219_v52 = vld [vmem:[%s3305_s13 + $0xf0] sm:$0xff] }
 0xff7   : > { %1986 = vmatpush.msra.mxu0 %v2219_v52 }
 0xff9   : > { %v1786_v54 = vpop.xlane.xlu1 %1785 }
 0xffa   : > { %v1787_v55 = vsub.f32 %v1781_v47, %v1786_v54  ;;  %v2290_v47 = vld [vmem:[%s3302_s10 + $0x1] ss:$0 sm:$0xff]  ;;  %v2218_v54 = vld [vmem:[%s3305_s13 + $0xe8] sm:$0xff] }
 0xffb   : > { %1987 = vmatpush.msra.mxu0 %v2218_v54 }
 0xffc   : > { %v2328_v56 = vpop.eup %2327  ;;  %v1788_v57 = vmul.f32 1.442695, %v1787_v55  ;;  %v2217_v55 = vld [vmem:[%s3305_s13 + $0xe0] sm:$0xff] }
 0xffd   : > { %v1700_v59 = vsel %vm929_vm7, %v2328_v56, 0.0  ;;  %1988 = vmatpush.msra.mxu0 %v2217_v55 }
 0xffe   : > { %2329 = vpow2.f32 %v1788_v57  ;;  %1701 = vadd.xlane.f32.xlu1 %v1700_v59  ;;  %v2215_v57 = vld [vmem:[%s3305_s13 + $0xd0] sm:$0xff]  ;;  %v2291_v59 = vld [vmem:[%s3304_s12 + $0x1] ss:$0 sm:$0xff] }
 0xfff   : > { %2331 = vrcp.f32 %v1524_v61  ;;  %v2213_v61 = vld [vmem:[%s3305_s13 + $0xc0] sm:$0xff] }
0x1004   : > { %v2330_v60 = vpop.eup %2329 }
0x1005   : > { %v1790_v29 = vsel %vm929_vm7, %v2330_v60, 0.0  ;;  %v2332_v62 = vpop.eup %2331 }
0x1006   : > { %1791 = vadd.xlane.f32.xlu0 %v1790_v29  ;;  %v1526_v63 = vmul.f32 %v2332_v62, %v2326_v41 }
0x1011   : > { %v1528_v0 = vpop.permute.xlu1 %1527 }
0x1012   : > { %2177 = vmatpush.msk.msra.mxu1 %vm947_vm8, %v1528_v0 }
0x1013   : > { %2178 = vmatmul.msk.f32.vlgmr.msra.gmra.mxu1 %vm943_vm9, %v1526_v63  ;;  %v2212_v63 = vld [vmem:[%s3305_s13 + $0xb8] sm:$0xff] }
0x1014   : > { %1638 = vmatpush.msrb.mxu1 %v2172_v1  ;;  %v2211_v1 = vld [vmem:[%s3305_s13 + $0xb0] sm:$0xff] }
0x1016   : > { %2187 = vmatpush.msk.msra.mxu1 %vm947_vm8, %v1706_v2 }
0x101a   : > { %1795 = vrot.lane.b32.xlu0 %v3086_v17, %s3361_s21 }
0x101b   : > { %2183 = vmatmul.msk.f32.vlgmr.msrb.gmra.mxu1 %vm903_vm6, %v1617_v44  ;;  %v2289_v44 = vld [vmem:[%s3301_s9 + $0x1] ss:$0 sm:$0xff] }
0x1071   : > { %v1702_v4 = vpop.xlane.xlu1 %1701 }
0x1072   : > { %2333 = vrcp.f32 %v1702_v4 }
0x1078   : > { %v2334_v5 = vpop.eup %2333 }
0x1079   : > { %v1704_v6 = vmul.f32 %v2334_v5, %v2328_v56  ;;  %v1792_v7 = vpop.xlane.xlu0 %1791  ;;  %v2216_v56 = vld [vmem:[%s3305_s13 + $0xd8] sm:$0xff]  ;;  %v2209_v5 = vld [vmem:[%s3305_s13 + $0xa0] sm:$0xff] }
0x107a   : > { %2335 = vrcp.f32 %v1792_v7  ;;  %1989 = vmatpush.msra.mxu0 %v2216_v56 }
0x107b   : > { %2188 = vmatmul.msk.f32.vlgmr.msra.gmra.mxu1 %vm943_vm9, %v1704_v6 }
0x107c   : > { %1990 = vmatpush.msra.mxu0 %v2215_v57  ;;  %v2041_v57 = vld [vmem:[%s3309_s17 + $0x18] sm:$0xff] }
0x1080   : > { %v2336_v8 = vpop.eup %2335 }
0x1081   : > { %v1794_v9 = vmul.f32 %v2336_v8, %v2330_v60  ;;  %v2214_v60 = vld [vmem:[%s3305_s13 + $0xc8] sm:$0xff]  ;;  %v2208_v8 = vld [vmem:[%s3305_s13 + $0x98] sm:$0xff] }
0x1082   : > { %1991 = vmatpush.msra.mxu0 %v2214_v60  ;;  %v2038_v60 = vld [vmem:[%s3309_s17] sm:$0xff] }
0x1084   : > { %1992 = vmatpush.msra.mxu0 %v2213_v61 }
0x1086   : > { %1993 = vmatpush.msra.mxu0 %v2212_v63 }
0x1088   : > { %1994 = vmatpush.msra.mxu0 %v2211_v1 }
0x108a   : > { %1995 = vmatpush.msra.mxu0 %v2210_v3 }
0x108c   : > { %v1796_v10 = vpop.permute.xlu0 %1795  ;;  %1996 = vmatpush.msra.mxu0 %v2209_v5  ;;  %v2293_v5 = vld [vmem:[%s3307_s15] ss:$0 sm:$0xff] }
0x108d   : > { %2192 = vmatpush.msk.msrb.mxu1 %vm947_vm8, %v1796_v10 }
0x108e   : > { %2193 = vmatmul.msk.f32.vlgmr.msrb.gmra.mxu1 %vm943_vm9, %v1794_v9  ;;  %1997 = vmatpush.msra.mxu0 %v2208_v8 }
0x108f   : > { %2058 = vmatpush.msra.mxu1 %v2041_v57 }
0x1090   : > { %v1551_v11 = vpop.f32.mrf.mxu1 }
0x1091   : > { %2184 = vmatmul.msk.f32.vlgmr.msrb.gmra.mxu3 %vm903_vm6, %v1551_v11  ;;  %v2207_v11 = vld [vmem:[%s3305_s13 + $0x90] sm:$0xff] }
0x1092   : > { %1912 = vmatpush.msrb.mxu3 %v2201_v33  ;;  %1998 = vmatpush.msra.mxu0 %v2207_v11 }
0x1098   : > { %v1640_v14 = vpop.f32.mrf.mxu1 }
0x10f8   : > { %v1729_v15 = vpop.f32.mrf.mxu1 }
0x10f9   : > { %2189 = vmatmul.msk.f32.vlgmr.msra.gmra.mxu3 %vm903_vm6, %v1729_v15  ;;  %v2205_v15 = vld [vmem:[%s3305_s13 + $0x80] sm:$0xff] }
0x110b   : > { %v1819_v16 = vpop.f32.mrf.mxu1 }
0x110c   : > { %2194 = vmatmul.msk.f32.vlgmr.msra.gmra.mxu2 %vm903_vm6, %v1819_v16 }
0x1114   : > { %v1663_v17 = vpop.f32.mrf.mxu3 }
0x1115   : > { %v1664_v19 = vadd.f32 %v1663_v17, %v1640_v14  ;;  %v2206_v14 = vld [vmem:[%s3305_s13 + $0x88] sm:$0xff] }
0x1116   : > { %1999 = vmatpush.msra.mxu0 %v2206_v14 }
0x1118   : > { %2000 = vmatpush.msra.mxu0 %v2205_v15 }
0x117c   : > { %v1752_v18 = vpop.f32.mrf.mxu3 }
0x117d   : > { %v1755_v20 = vadd.f32 %v1752_v18, %v1664_v19 }
0x118f   : > { %v1842_v21 = vpop.f32.mrf.mxu2 }
0x1190   : > { %v1845_v22 = vadd.f32 %v1842_v21, %v1755_v20 }
0x1192   : > { %v1846_v24 = vadd.f32 %v1845_v22, %v3056_v53  ;;  %v2200_v53 = vld [vmem:[%s3303_s11 + $0x30] sm:$0xff] }
0x1193   : > { %1913 = vmatpush.msrb.mxu3 %v2200_v53 }
0x1194   : > { %v3152_v25 = vadd.f32 %v2288_v23, %v1846_v24 }
0x1195   : > { %1914 = vmatpush.msrb.mxu3 %v2199_v34 }
0x1196   : > { %v1857_v26 = vsel %vm825_vm0, %v3152_v25, 0.0 }
0x1197   : > { %1858 = vadd.xlane.f32.xlu2 %v1857_v26  ;;  %1915 = vmatpush.msrb.mxu3 %v2198_v35 }
0x120a   : > { %v1859_v27 = vpop.xlane.xlu2 %1858 }
0x120b   : > { %v1860_v28 = vmul.f32 %v1859_v27, %v2880_v58 }
0x120d   : > { %v1861_v30 = vsub.f32 %v3152_v25, %v1860_v28 }
0x120f   : > { %v1862_v31 = vmul.f32 %v1861_v30, %v1861_v30 }
0x1211   : > { %v1863_v32 = vsel %vm825_vm0, %v1862_v31, 0.0 }
0x1212   : > { %1864 = vadd.xlane.f32.xlu0 %v1863_v32 }
0x1285   : > { %v1865_v36 = vpop.xlane.xlu0 %1864 }
0x1286   : > { %v1866_v50 = vmul.f32 %v1865_v36, %v2880_v58 }
0x1288   : > { %v1867_v37 = vadd.f32 1e-06, %v1866_v50 }
0x128a   : > { %2337 = vrsqrt.f32 %v1867_v37  ;;  %vm1874_vm7 = vweird.f32 %v1867_v37 }
0x1290   : > { %v2338_v38 = vpop.eup %2337 }
0x1291   : > { %v1869_v39 = vmul.f32 %v2338_v38, %v1867_v37  ;;  %vm1875_vm6 = vweird.f32 %v2338_v38 }
0x1292   : > { %vm1876_vm8 = vmor %vm1874_vm7, %vm1875_vm6 }
0x1293   : > { %v1870_v40 = vmul.f32 %v2338_v38, %v1869_v39 }
0x1295   : > { %v1871_v41 = vmul.f32 0.5, %v1870_v40 }
0x1297   : > { %v1872_v42 = vsub.f32 1.5, %v1871_v41 }
0x1299   : > { %v1873_v43 = vmul.f32 %v2338_v38, %v1872_v42 }
0x129b   : > { %v1877_v45 = vsel %vm1876_vm8, %v2338_v38, %v1873_v43 }
0x129c   : > { %v1878_v46 = vmul.f32 %v1877_v45, %v1861_v30  ;;  %v2292_v45 = vld [vmem:[%s3306_s14 + $0x1] ss:$0 sm:$0xff] }
0x129e   : > { %v1882_v48 = vmul.f32 %v2289_v44, %v1878_v46 }
0x12a0   : > { %v1886_v49 = vadd.f32 %v2290_v47, %v1882_v48 }
0x12a2   : > { %2203 = vmatmul.msk.f32.vlgmr.msrb.gmra.mxu3 %vm871_vm5, %v1886_v49 }
0x1325   : > { %v1917_v29 = vpop.f32.mrf.mxu3 }
0x1326   : > { %v1918_v62 = vadd.f32 %v2291_v59, %v1917_v29  ;;  %v2039_v59 = vld [vmem:[%s3309_s17 + $0x8] sm:$0xff] }
0x1328   : > { %v1921_v0 = vmul.f32 0.70710677, %v1918_v62  ;;  %v1920_v42 = vmul.f32 0.5, %v1918_v62 }
0x132a   : > { %v2204_v2 = vclamps-f32 %v1921_v0, 3.832507 }
0x132c   : > { %v1924_v4 = vmul.f32 %v2204_v2, %v2204_v2 }
0x132e   : > { %v1925_v6 = vmul.f32 -2.7261424e-10, %v1924_v4  ;;  %v1938_v7 = vmul.f32 -1.45660715e-05, %v1924_v4 }
0x1330   : > { %v1926_v9 = vadd.f32 2.7706815e-08, %v1925_v6  ;;  %v1939_v10 = vadd.f32 -0.00021337405, %v1938_v7 }
0x1332   : > { %v1927_v12 = vmul.f32 %v1926_v9, %v1924_v4  ;;  %v1940_v13 = vmul.f32 %v1939_v10, %v1924_v4  ;;  %v2042_v10 = vld [vmem:[%s3363_s25] sm:$0x1] }
0x1334   : > { %v1928_v16 = vadd.f32 -2.101024e-06, %v1927_v12  ;;  %v1941_v17 = vadd.f32 -0.001682827, %v1940_v13 }
0x1336   : > { %v1929_v18 = vmul.f32 %v1928_v16, %v1924_v4  ;;  %v1942_v19 = vmul.f32 %v1941_v17, %v1924_v4 }
0x1338   : > { %v1930_v20 = vadd.f32 -5.6925062e-05, %v1929_v18  ;;  %v1943_v21 = vadd.f32 -0.0073733293, %v1942_v19 }
0x133a   : > { %v1931_v22 = vmul.f32 %v1930_v20, %v1924_v4  ;;  %v1944_v23 = vmul.f32 %v1943_v21, %v1924_v4 }
0x133c   : > { %v1932_v24 = vadd.f32 -0.00073499064, %v1931_v22  ;;  %v1945_v26 = vadd.f32 -0.014264739, %v1944_v23 }
0x133e   : > { %v1933_v27 = vmul.f32 %v1932_v24, %v1924_v4  ;;  %2339 = vrcp.f32 %v1945_v26  ;;  %v1957_v53 = vand.u32 2147483648, %v1945_v26  ;;  %v1955_v36 = vand.u32 2147483647, %v1945_v26 }
0x133f   : > { %vm1951_vm10 = vweird.f32 %v1945_v26 }
0x1340   : > { %v1934_v28 = vadd.f32 -0.0029546, %v1933_v27  ;;  %v1958_v37 = vor.u32 1.1754944e-38, %v1957_v53  ;;  %vm1956_vm12 = vcmp.eq.f32.partialorder %v1955_v36, 8.507059e+37 }
0x1342   : > { %v1935_v31 = vmul.f32 %v1934_v28, %v1924_v4 }
0x1344   : > { %v2340_v30 = vpop.eup %2339  ;;  %v1936_v34 = vadd.f32 -0.016096033, %v1935_v31 }
0x1345   : > { %v1947_v32 = vmul.f32 %v2340_v30, %v1945_v26  ;;  %vm1952_vm9 = vweird.f32 %v2340_v30 }
0x1346   : > { %vm1953_vm11 = vmor %vm1951_vm10, %vm1952_vm9  ;;  %v1937_v38 = vmul.f32 %v2204_v2, %v1936_v34 }
0x1347   : > { %v1948_v33 = vsub.f32 1.0, %v1947_v32 }
0x1349   : > { %v1949_v35 = vmul.f32 %v2340_v30, %v1948_v33 }
0x134b   : > { %v1950_v50 = vadd.f32 %v2340_v30, %v1949_v35 }
0x134d   : > { %v1954_v39 = vsel %vm1953_vm11, %v2340_v30, %v1950_v50 }
0x134e   : > { %v1959_v40 = vsel %vm1956_vm12, %v1958_v37, %v1954_v39 }
0x134f   : > { %v1960_v41 = vmul.f32 %v1959_v40, %v1937_v38 }
0x1351   : > { %v1961_v43 = vadd.f32 1.0, %v1960_v41 }
0x1353   : > { %v1962_v44 = vmul.f32 %v1961_v43, %v1920_v42 }
0x1355   : > { %2001 = vmatmul.f32.vlgmr.msra.gmra.mxu0 %v1962_v44 }
0x13d2   : > { %v2002_v46 = vpop.f32.mrf.mxu0 }
0x13d3   : > { %v2003_v47 = vadd.f32 %v2292_v45, %v2002_v46 }
0x13d5   : > { %v2005_v48 = vadd.f32 %v2003_v47, %v3152_v25  ;;  %v2040_v25 = vld [vmem:[%s3309_s17 + $0x10] sm:$0xff] }
0x13d6   : > { %2059 = vmatpush.msra.mxu1 %v2040_v25 }
0x13d7   : > { %v2008_v49 = vsel %vm825_vm0, %v2005_v48, 0.0 }
0x13d8   : > { %2009 = vadd.xlane.f32.xlu1 %v2008_v49  ;;  %2060 = vmatpush.msra.mxu1 %v2039_v59 }
0x13da   : > { %2061 = vmatpush.msra.mxu1 %v2038_v60 }
0x144b   : > { %v2010_v51 = vpop.xlane.xlu1 %2009 }
0x144c   : > { %v2011_v52 = vmul.f32 %v2010_v51, %v2880_v58 }
0x144e   : > { %v2012_v54 = vsub.f32 %v2005_v48, %v2011_v52 }
0x1450   : > { %v2013_v55 = vmul.f32 %v2012_v54, %v2012_v54 }
0x1452   : > { %v2014_v56 = vsel %vm825_vm0, %v2013_v55, 0.0 }
0x1453   : > { %2015 = vadd.xlane.f32.xlu1 %v2014_v56 }
0x14c6   : > { %v2016_v61 = vpop.xlane.xlu1 %2015 }
0x14c7   : > { %v2017_v29 = vmul.f32 %v2016_v61, %v2880_v58  ;;  %v2294_v58 = vld [vmem:[%s3308_s16] ss:$0 sm:$0xff] }
0x14c9   : > { %v2018_v62 = vadd.f32 1e-06, %v2017_v29 }
0x14cb   : > { %2341 = vrsqrt.f32 %v2018_v62  ;;  %vm2025_vm13 = vweird.f32 %v2018_v62 }
0x14d1   : > { %v2342_v63 = vpop.eup %2341 }
0x14d2   : > { %v2020_v0 = vmul.f32 %v2342_v63, %v2018_v62  ;;  %vm2026_vm0 = vweird.f32 %v2342_v63 }
0x14d3   : > { %vm2027_vm14 = vmor %vm2025_vm13, %vm2026_vm0 }
0x14d4   : > { %v2021_v1 = vmul.f32 %v2342_v63, %v2020_v0 }
0x14d6   : > { %v2022_v2 = vmul.f32 0.5, %v2021_v1 }
0x14d8   : > { %v2023_v3 = vsub.f32 1.5, %v2022_v2 }
0x14da   : > { %v2024_v4 = vmul.f32 %v2342_v63, %v2023_v3 }
0x14dc   : > { %v2028_v6 = vsel %vm2027_vm14, %v2342_v63, %v2024_v4 }
0x14dd   : > { %v2029_v7 = vmul.f32 %v2028_v6, %v2012_v54 }
0x14df   : > { %v2033_v8 = vmul.f32 %v2293_v5, %v2029_v7 }
0x14e1   : > { %v2037_v9 = vadd.f32 %v2294_v58, %v2033_v8 }
0x14e3   : > { %2222 = vmatmul.msk.f32.vlgmr.msra.gmra.mxu1 %vm871_vm5, %v2037_v9 }
0x1560   : > { %v2063_v11 = vpop.f32.mrf.mxu1 }
0x1561   : > { %v2064_v12 = vadd.f32 %v2063_v11, %v2042_v10 }
0x1563   : > { %2066 = vst [vmem:[%s594_s20] sm:$0x1] %v2064_v12 }
0x1564   : > { %2370 = shalt.err (!%p2367_p3)
}
0x1565   : > { %2226 = dma.vmem_to_hbm [thread:$0]  (%p2557_p5), %s2079_s0, 16, %s2081_s4, %s2068_s28  }
0x1566 PF: > { %s3364_s18 = sld [smem:[#allocation7_spill]] }
0x1567   : > { %s3365_s22 = sld [smem:[#allocation5_spill]] }
0x156c   : > { %p2232_p4 = scmp.ge.s32.totalorder %s3364_s18, 2 }
0x156d   : > { %s2092_s20 = sand.u32 1, %s3365_s22  }
0x156e   : > { %p2229_p7 = pnand %p2232_p4, %p2561_p6  ;;  %s2093_s1 = scalar_lea.sflag [#allocation3], %s2092_s20 }
0x1570   : > { %p2230_p8 = pneg %p2229_p7 }
0x1572   : > { %2388 = dma.done.wait (%p2230_p8), %s2093_s1, 16  }
0x1573   : > { %2390 = vsyncadd (%p2230_p8), %s2093_s1, 4294967280  ;;  %s3367_s21 = sld [smem:[#allocation8_spill]]  ;;  %s3370_s0 = smov %s2397_s30 }
0x1574   : > { %s3368_s5 = sld [smem:[#allocation6_spill]] }
0x1575   : > { %s3369_s20 = sld [smem:[#allocation9_spill]] }
0x1579   : > { %p29_p9 = scmp.ge.s32.totalorder %s3367_s21, 4  }
0x157a   : > { %s3371_s30 = smov %s3368_s5 }
0x157b   :  { %31 = sbr.rel (!%p29_p9) target bundleno = 11 (0xb), region = 143 }
0x1580   :  { %2098 = vsyncpa [#allocation3], 1 }
0x1581   :  { %2100 = vsyncpa [#allocation3 + $0x1], 1 }

</bundles_post_ra>
